<compile_context>
chip_gen: v6e
topology: v6e:2x2x1
jax: 0.10.0
libtpu: 0.0.40
codegen_flags: <defaults>
</compile_context>

<pallas_src>
import math

import jax
import jax.numpy as jnp
from jax.experimental import pallas as pl
from jax.experimental.pallas import tpu as pltpu


def _round_up(x: int, m: int) -> int:
    return ((x + m - 1) // m) * m


# --------------------------------------------------------------------------- #
# Kernels
# --------------------------------------------------------------------------- #

def _gru_core(vx, h_ref, wrz_ref, wh_ref, out_ref):
    """Shared GRU-cell math. vx: (TB, 3D) f32 (bias already folded into it)."""
    D = out_ref.shape[-1]
    h = h_ref[...].astype(jnp.float32)          # f32 gate math
    h_mx = h.astype(wrz_ref.dtype)              # MXU operand dtype (bf16/f32)

    # Fused r/z projection: one (TB,D)@(D,2D) dot fills the 256-wide MXU.
    # Column-D slices of the (TB, 2D) result are lane-aligned -> free.
    vh = jnp.dot(h_mx, wrz_ref[...], preferred_element_type=jnp.float32)

    vx_x = vx[:, :D]
    vx_r = vx[:, D:2 * D]
    vx_z = vx[:, 2 * D:]

    r = jax.nn.sigmoid(vx_r + vh[:, :D])        # f32 gates (VPU/EUP)
    z = jax.nn.sigmoid(vx_z + vh[:, D:])

    rh = (r * h).astype(wh_ref.dtype)
    h_cand = jnp.tanh(
        jnp.dot(rh, wh_ref[...], preferred_element_type=jnp.float32) + vx_x)

    # h + z*(h_cand - h) == (1-z)*h + z*h_cand, one fewer op / live (TB,D) tile.
    out_ref[...] = (h + z * (h_cand - h)).astype(out_ref.dtype)


def _gru_kernel(vx_ref, h_ref, wrz_ref, wh_ref, out_ref):
    """Unfused path: Vx gathered in the wrapper (bf16/f32 rows), upcast here."""
    _gru_core(vx_ref[...].astype(jnp.float32), h_ref, wrz_ref, wh_ref, out_ref)


def _gru_fused_kernel(x_ref, h_ref, table_ref, wrz_ref, wh_ref, out_ref):
    """Fused path: embedding lookup done in-kernel as a one-hot MXU matmul
    against the VMEM-resident bias-folded table, so Vx never touches HBM."""
    idx = x_ref[...]                                          # (TB, 1) int32
    tb = idx.shape[0]
    dim_in = table_ref.shape[0]
    onehot = (idx == jax.lax.broadcasted_iota(jnp.int32, (tb, dim_in), 1)
              ).astype(table_ref.dtype)                       # (TB, dim_in)
    vx = jnp.dot(onehot, table_ref[...], preferred_element_type=jnp.float32)
    _gru_core(vx, h_ref, wrz_ref, wh_ref, out_ref)


# --------------------------------------------------------------------------- #
# Parameter prep + wrapper
# --------------------------------------------------------------------------- #

def prepare_params(Wx_weight, Wrz, Wh, Bh, *, table_dtype=jnp.bfloat16,
                   compute_dtype=jnp.bfloat16):
    """One-time parameter prep (amortized across forward calls).

    * Folds Bh into the embedding table: Emb(X) + Bh == (Emb + Bh)(X).
    * Keeps the table row-major contiguous (dim_in, 3D): a leading-axis row
      gather, and each gathered batch tile is one contiguous DMA.
    * Stores the table (and hence the Vx stream) in `table_dtype` (bf16 by
      default: the dominant HBM stream, halved).
    * Casts recurrent weights to the MXU compute dtype; accumulation and gate
      math stay f32 inside the kernel.
    """
    dim_in, three_d = Wx_weight.shape
    D = Wh.shape[0]
    assert three_d == 3 * D and Wrz.shape == (D, 2 * D) and Bh.shape == (3 * D,)
    table = (Wx_weight.astype(jnp.float32)
             + Bh[None, :].astype(jnp.float32)).astype(table_dtype)
    return table, Wrz.astype(compute_dtype), Wh.astype(compute_dtype)


def gru_embedding_forward(X, H, params, *, block_b=512, fuse_gather=None):
    """X: (B,) int indices; H: (B, D) f32. Returns new hidden state (B, D) f32."""
    table, Wrz_c, Wh_c = params
    B, D = H.shape
    dim_in, three_d = table.shape
    assert three_d == 3 * D
    # Lane-dense hidden size: free gate slicing, unmasked (full-vreg) stores.
    # TODO(synk): support GRU4Rec-style D (e.g. 100) by padding D up to 128.
    assert D % 128 == 0, "hidden size must be a multiple of 128"

    table_bytes = table.size * table.dtype.itemsize
    if fuse_gather is None:
        # One-hot MXU gather only pays off when the table is VMEM-resident and
        # dim_in is small enough that TB*dim_in*3D flops stay negligible.
        # TODO(synk): large VMEM-resident tables want a true in-kernel dynamic
        # gather / per-row DMA gather instead of the one-hot matmul.
        fuse_gather = (table_bytes <= 8 * 1024 * 1024) and (dim_in <= 2048)

    # Batch tile: large tiles amortize the ~0.35us/grid-step overhead, but keep
    # ~4 grid steps when the batch allows so each v7x TensorCore gets >=2 steps
    # to pipeline activation DMA behind MXU work.
    TB = min(block_b, _round_up(B, 8), _round_up(max(256, pl.cdiv(B, 4)), 8))
    B_pad = _round_up(B, TB)
    grid = (B_pad // TB,)

    # Pad the cheap index vector (and H) -- never the gathered Vx tensor.
    X_i32 = X.astype(jnp.int32)
    if B_pad != B:
        X_i32 = jnp.pad(X_i32, (0, B_pad - B))
        H_in = jnp.pad(H, ((0, B_pad - B), (0, 0)))
    else:
        H_in = H

    # VMEM budget: resident weights/table + double-buffered activation tiles.
    resident = (Wrz_c.size * Wrz_c.dtype.itemsize
                + Wh_c.size * Wh_c.dtype.itemsize
                + (table_bytes if fuse_gather else 0))
    tile = TB * D * 4 * 2 + TB * 4                            # H, out, indices
    tile += TB * 3 * D * (4 if fuse_gather else table.dtype.itemsize)
    vmem_need = resident + 3 * tile
    vmem_limit = int(vmem_need * 1.25) if vmem_need > 30 * 1024 * 1024 else None

    compiler_params = pltpu.CompilerParams(
        dimension_semantics=("parallel",),        # independent tiles: megacore
        vmem_limit_bytes=vmem_limit,
    )
    out_shape = jax.ShapeDtypeStruct((B_pad, D), jnp.float32)
    out_spec = pl.BlockSpec((TB, D), lambda i: (i, 0))
    h_spec = pl.BlockSpec((TB, D), lambda i: (i, 0))
    resident_specs = [
        pl.BlockSpec((D, 2 * D), lambda i: (0, 0)),           # Wrz (resident)
        pl.BlockSpec((D, D), lambda i: (0, 0)),               # Wh  (resident)
    ]

    # TODO(synk): when this cell runs inside a per-timestep scan, move the time
    # loop into the kernel (extra "arbitrary" grid axis, H carried in VMEM
    # scratch, input_output_aliases for the hidden state) so H and the resident
    # weights never round-trip HBM per step.
    if fuse_gather:
        out = pl.pallas_call(
            _gru_fused_kernel,
            out_shape=out_shape,
            grid_spec=pltpu.PrefetchScalarGridSpec(
                num_scalar_prefetch=0,
                grid=grid,
                in_specs=[
                    pl.BlockSpec((TB, 1), lambda i: (i, 0)),          # indices
                    h_spec,
                    pl.BlockSpec((dim_in, 3 * D), lambda i: (0, 0)),  # table
                ] + resident_specs,
                out_specs=out_spec,
            ),
            compiler_params=compiler_params,
        )(X_i32.reshape(B_pad, 1), H_in, table, Wrz_c, Wh_c)
    else:
        # Contiguous leading-axis row gather (bf16 by default) in the wrapper.
        Vx = jnp.take(table, X_i32, axis=0)                   # (B_pad, 3D)
        out = pl.pallas_call(
            _gru_kernel,
            out_shape=out_shape,
            grid_spec=pltpu.PrefetchScalarGridSpec(
                num_scalar_prefetch=0,
                grid=grid,
                in_specs=[pl.BlockSpec((TB, 3 * D), lambda i: (i, 0)),
                          h_spec] + resident_specs,
                out_specs=out_spec,
            ),
            compiler_params=compiler_params,
        )(Vx, H_in, Wrz_c, Wh_c)

    return out[:B] if B_pad != B else out


# --------------------------------------------------------------------------- #
# Demo / correctness check
# --------------------------------------------------------------------------- #

def _init_parameter_matrix(key, shape, dim0_scale=1, dim1_scale=1):
    # Matches init_parameter_matrix: U(-sigma, sigma),
    # sigma = sqrt(6 / (d0/dim0_scale + d1/dim1_scale))
    sigma = math.sqrt(6.0 / (shape[0] / dim0_scale + shape[1] / dim1_scale))
    return jax.random.uniform(key, shape, jnp.float32, minval=-sigma, maxval=sigma)


def make_params(key, dim_in, dim_out):
    k0, k1, k2 = jax.random.split(key, 3)
    Wx_weight = _init_parameter_matrix(k0, (dim_in, dim_out * 3), dim1_scale=3)
    Wrz = _init_parameter_matrix(k1, (dim_out, dim_out * 2), dim1_scale=2)
    Wh = _init_parameter_matrix(k2, (dim_out, dim_out * 1), dim1_scale=1)
    Bh = jnp.zeros((dim_out * 3,), jnp.float32)
    return Wx_weight, Wrz, Wh, Bh


def _reference_forward(X, H, Wx_weight, Wrz, Wh, Bh):
    D = H.shape[1]
    Vx = Wx_weight[X] + Bh
    Vrz = H @ Wrz
    vx_x, vx_r, vx_z = Vx[:, :D], Vx[:, D:2 * D], Vx[:, 2 * D:]
    vh_r, vh_z = Vrz[:, :D], Vrz[:, D:]
    r = jax.nn.sigmoid(vx_r + vh_r)
    z = jax.nn.sigmoid(vx_z + vh_z)
    h = jnp.tanh((r * H) @ Wh + vx_x)
    return (1.0 - z) * H + z * h


if __name__ == "__main__":
    # Small but lane/MXU-friendly demo shapes: D=128 (lane-dense), B=512 so the
    # batch-tiled grid has >1 step, tiny vocab so the fused-gather path engages.
    dim_in, dim_out, batch = 64, 128, 512

    key = jax.random.PRNGKey(0)
    kp, kb, kx, kh = jax.random.split(key, 4)

    Wx_weight, Wrz, Wh, Bh = make_params(kp, dim_in, dim_out)
    # Module init zeros Bh; use a nonzero bias (as after training) so the
    # bias-folding path is actually exercised.
    Bh = 0.1 * jax.random.normal(kb, (3 * dim_out,), jnp.float32)

    X = jax.random.randint(kx, (batch,), 0, dim_in, dtype=jnp.int32)
    H = jax.random.normal(kh, (batch, dim_out), jnp.float32)

    ref = _reference_forward(X, H, Wx_weight, Wrz, Wh, Bh)

    # 1) Fused in-kernel gather, exact f32 path.
    params_f32 = prepare_params(Wx_weight, Wrz, Wh, Bh,
                                table_dtype=jnp.float32,
                                compute_dtype=jnp.float32)
    out = jax.block_until_ready(
        gru_embedding_forward(X, H, params_f32, fuse_gather=True))
    assert out.shape == (batch, dim_out)
    assert jnp.allclose(out, ref, atol=1e-4, rtol=1e-4), "fused f32 path mismatch"

    # 2) Fused in-kernel gather, bf16 table + bf16 MXU operands (f32 gates/acc).
    params_bf16 = prepare_params(Wx_weight, Wrz, Wh, Bh)
    out = jax.block_until_ready(
        gru_embedding_forward(X, H, params_bf16, fuse_gather=True))
    assert jnp.allclose(out, ref, atol=3e-2, rtol=3e-2), "fused bf16 path mismatch"

    # 3) Unfused path (wrapper row gather of the contiguous bf16 table).
    out = jax.block_until_ready(
        gru_embedding_forward(X, H, params_bf16, fuse_gather=False))
    assert jnp.allclose(out, ref, atol=3e-2, rtol=3e-2), "unfused bf16 path mismatch"

    # 4) Unfused exact f32 path.
    out = jax.block_until_ready(
        gru_embedding_forward(X, H, params_f32, fuse_gather=False))
    assert jnp.allclose(out, ref, atol=1e-4, rtol=1e-4), "unfused f32 path mismatch"

    print("KERNEL_OK")
</pallas_src>

<mosaic_0001>
module attributes {stable_mosaic.version = 11 : i64} {
  func.func @_gru_fused_kernel(%arg0: i32, %arg1: memref<256x1xi32, #tpu.memory_space<vmem>>, %arg2: memref<256x128xf32, #tpu.memory_space<vmem>>, %arg3: memref<64x384xf32, #tpu.memory_space<vmem>>, %arg4: memref<128x256xf32, #tpu.memory_space<vmem>>, %arg5: memref<128x128xf32, #tpu.memory_space<vmem>>, %arg6: memref<256x128xf32, #tpu.memory_space<vmem>>) attributes {dimension_semantics = [#tpu.dimension_semantics<parallel>], iteration_bounds = array<i64: 2>, scalar_prefetch = 0 : i64, scratch_operands = 0 : i64, tpu.core_type = #tpu.core_type<tc>, window_params = [{transform_indices = @transform_0, window_bounds = array<i64: 256, 1>}, {transform_indices = @transform_1, window_bounds = array<i64: 256, 128>}, {pipeline_mode = #tpu.pipeline_mode<synchronous>, transform_indices = @transform_2, window_bounds = array<i64: 64, 384>}, {pipeline_mode = #tpu.pipeline_mode<synchronous>, transform_indices = @transform_3, window_bounds = array<i64: 128, 256>}, {pipeline_mode = #tpu.pipeline_mode<synchronous>, transform_indices = @transform_4, window_bounds = array<i64: 128, 128>}, {transform_indices = @transform_5, window_bounds = array<i64: 256, 128>}]} {
    %c0 = arith.constant 0 : index
    %c0_0 = arith.constant 0 : index
    %0 = vector.load %arg1[%c0, %c0_0] : memref<256x1xi32, #tpu.memory_space<vmem>>, vector<256x1xi32>
    %1 = tpu.iota {dimensions = array<i32: 1>} : vector<256x64xi32>
    %2 = vector.broadcast %0 : vector<256x1xi32> to vector<256x64xi32>
    %3 = arith.cmpi eq, %2, %1 : vector<256x64xi32>
    %4 = arith.extui %3 : vector<256x64xi1> to vector<256x64xi32>
    %5 = arith.sitofp %4 : vector<256x64xi32> to vector<256x64xf32>
    %c0_1 = arith.constant 0 : index
    %c0_2 = arith.constant 0 : index
    %6 = vector.load %arg3[%c0_1, %c0_2] : memref<64x384xf32, #tpu.memory_space<vmem>>, vector<64x384xf32>
    %cst = arith.constant dense<0.000000e+00> : vector<256x384xf32>
    %7 = tpu.matmul %5, %6, %cst {dimension_numbers = #tpu.dot_dimension_numbers<[1], [0], [0], [1], [0, 0, 1, 1], [], []>} : vector<256x64xf32>, vector<64x384xf32>, vector<256x384xf32> -> vector<256x384xf32>
    %c0_3 = arith.constant 0 : index
    %c0_4 = arith.constant 0 : index
    %8 = vector.load %arg2[%c0_3, %c0_4] : memref<256x128xf32, #tpu.memory_space<vmem>>, vector<256x128xf32>
    %c0_5 = arith.constant 0 : index
    %c0_6 = arith.constant 0 : index
    %9 = vector.load %arg4[%c0_5, %c0_6] : memref<128x256xf32, #tpu.memory_space<vmem>>, vector<128x256xf32>
    %cst_7 = arith.constant dense<0.000000e+00> : vector<256x256xf32>
    %10 = tpu.matmul %8, %9, %cst_7 {dimension_numbers = #tpu.dot_dimension_numbers<[1], [0], [0], [1], [0, 0, 1, 1], [], []>} : vector<256x128xf32>, vector<128x256xf32>, vector<256x256xf32> -> vector<256x256xf32>
    %11 = vector.extract_strided_slice %7 {offsets = [0, 0], sizes = [256, 128], strides = [1, 1]} : vector<256x384xf32> to vector<256x128xf32>
    %12 = vector.extract_strided_slice %7 {offsets = [0, 128], sizes = [256, 128], strides = [1, 1]} : vector<256x384xf32> to vector<256x128xf32>
    %13 = vector.extract_strided_slice %7 {offsets = [0, 256], sizes = [256, 128], strides = [1, 1]} : vector<256x384xf32> to vector<256x128xf32>
    %14 = vector.extract_strided_slice %10 {offsets = [0, 0], sizes = [256, 128], strides = [1, 1]} : vector<256x256xf32> to vector<256x128xf32>
    %15 = arith.addf %12, %14 : vector<256x128xf32>
    %16 = arith.negf %15 : vector<256x128xf32>
    %17 = math.exp %16 : vector<256x128xf32>
    %cst_8 = arith.constant 1.000000e+00 : f32
    %18 = vector.broadcast %cst_8 : f32 to vector<256x128xf32>
    %19 = arith.addf %18, %17 : vector<256x128xf32>
    %20 = arith.divf %18, %19 : vector<256x128xf32>
    %21 = vector.extract_strided_slice %10 {offsets = [0, 128], sizes = [256, 128], strides = [1, 1]} : vector<256x256xf32> to vector<256x128xf32>
    %22 = arith.addf %13, %21 : vector<256x128xf32>
    %23 = arith.negf %22 : vector<256x128xf32>
    %24 = math.exp %23 : vector<256x128xf32>
    %cst_9 = arith.constant 1.000000e+00 : f32
    %25 = vector.broadcast %cst_9 : f32 to vector<256x128xf32>
    %26 = arith.addf %25, %24 : vector<256x128xf32>
    %27 = arith.divf %25, %26 : vector<256x128xf32>
    %28 = arith.mulf %20, %8 : vector<256x128xf32>
    %c0_10 = arith.constant 0 : index
    %c0_11 = arith.constant 0 : index
    %29 = vector.load %arg5[%c0_10, %c0_11] : memref<128x128xf32, #tpu.memory_space<vmem>>, vector<128x128xf32>
    %cst_12 = arith.constant dense<0.000000e+00> : vector<256x128xf32>
    %30 = tpu.matmul %28, %29, %cst_12 {dimension_numbers = #tpu.dot_dimension_numbers<[1], [0], [0], [1], [0, 0, 1, 1], [], []>} : vector<256x128xf32>, vector<128x128xf32>, vector<256x128xf32> -> vector<256x128xf32>
    %31 = arith.addf %30, %11 : vector<256x128xf32>
    %32 = math.tanh %31 : vector<256x128xf32>
    %33 = arith.subf %32, %8 : vector<256x128xf32>
    %34 = arith.mulf %27, %33 : vector<256x128xf32>
    %35 = arith.addf %8, %34 : vector<256x128xf32>
    %c0_13 = arith.constant 0 : index
    %c0_14 = arith.constant 0 : index
    %36 = vector.load %arg6[%c0_13, %c0_14] : memref<256x128xf32, #tpu.memory_space<vmem>>, vector<256x128xf32>
    tpu.vector_store %arg6[%c0_13, %c0_14], %35 {strides = array<i32>} : memref<256x128xf32, #tpu.memory_space<vmem>>, vector<256x128xf32>,
    return
  }
  func.func @transform_0(%arg0: i32) -> (i32, i32) {
    %c0_i32 = arith.constant 0 : i32
    %c0_i32_0 = arith.constant 0 : i32
    return %arg0, %c0_i32 : i32, i32
  }
  func.func @transform_1(%arg0: i32) -> (i32, i32) {
    %c0_i32 = arith.constant 0 : i32
    %c0_i32_0 = arith.constant 0 : i32
    return %arg0, %c0_i32 : i32, i32
  }
  func.func @transform_2(%arg0: i32) -> (i32, i32) {
    %c0_i32 = arith.constant 0 : i32
    %c0_i32_0 = arith.constant 0 : i32
    %c0_i32_1 = arith.constant 0 : i32
    return %c0_i32, %c0_i32_0 : i32, i32
  }
  func.func @transform_3(%arg0: i32) -> (i32, i32) {
    %c0_i32 = arith.constant 0 : i32
    %c0_i32_0 = arith.constant 0 : i32
    %c0_i32_1 = arith.constant 0 : i32
    return %c0_i32, %c0_i32_0 : i32, i32
  }
  func.func @transform_4(%arg0: i32) -> (i32, i32) {
    %c0_i32 = arith.constant 0 : i32
    %c0_i32_0 = arith.constant 0 : i32
    %c0_i32_1 = arith.constant 0 : i32
    return %c0_i32, %c0_i32_0 : i32, i32
  }
  func.func @transform_5(%arg0: i32) -> (i32, i32) {
    %c0_i32 = arith.constant 0 : i32
    %c0_i32_0 = arith.constant 0 : i32
    return %arg0, %c0_i32 : i32, i32
  }
}

</mosaic_0001>

<bundles_post_ra>
// kernel: tpu_custom_call.1
= control target key start
LH: loop header
LB: loop body
LE: loop exit
PB: predicated region body
PF: predicated region fallthrough
CT: control target
= control target key end

     0   :  { %10 = vsyncpa [#allocation3], 0  ;;  %s4556_s0 = inlined_call_operand.vmem [shape: s32[512,1], index: 0, kind: input, shape index: {}]   ;;  %s4557_s1 = inlined_call_operand.vmem [shape: f32[512,128], index: 1, kind: input, shape index: {}]   ;;  %s4558_s2 = inlined_call_operand.hbm [shape: f32[64,384], index: 2, kind: input, shape index: {}]   ;;  %s4559_s3 = inlined_call_operand.hbm [shape: f32[128,256], index: 3, kind: input, shape index: {}]   ;;  %s4560_s4 = inlined_call_operand.hbm [shape: f32[128,128], index: 4, kind: input, shape index: {}]   ;;  %s4561_s5 = inlined_call_operand.hbm [shape: f32[512,128], index: 5, kind: output, shape index: {}]  }
   0x1   :  { %11 = vsyncpa [#allocation6], 0 }
   0x2   :  { %12 = vsyncpa [#allocation4], 0 }
   0x3   :  { %14 = vsyncpa [#allocation4 + $0x1], 0  ;;  %s3481_s18 = smov 0   ;;  %s3483_s19 = smov 0  }
   0x4   :  { %s3485_s20 = smov 0   ;;  %s3487_s21 = smov 0  }
   0x5 LB: > { %s3502_s22 = sadd.s32 4294967295, %s3435_s21   ;;  %s2442_s23 = sadd.s32 4294967294, %s3435_s21   ;;  %s3435_s21 = sphi %s3487_s21, %s4689_s21   ;;  %s3431_s20 = sphi %s3485_s20, %s4688_s20   ;;  %s3427_s19 = sphi %s3483_s19, %s4687_s19   ;;  %s3423_s18 = sphi %s3481_s18, %s4686_s18  }
   0x6   : > { %s3506_s24 = sadd.s32 1, %s3435_s21   ;;  %s142_s25 = sadd.s32 1, %s3431_s20 }
   0x7   : > { %s139_s26 = ssub.s32 %s3435_s21, %s3506_s24  ;;  %p152_p0 = scmp.ne.s32.totalorder %s3431_s20, %s3427_s19 }
   0x8   : > { %p140_p1 = scmp.eq.s32.totalorder %s139_s26, 0  ;;  %p153_p2 = scmp.eq.s32.totalorder %s3502_s22, 1 }
   0x9   : > { %p158_p3 = scmp.ne.s32.totalorder %s3427_s19, %s3423_s18  ;;  %p159_p4 = scmp.eq.s32.totalorder %s2442_s23, 1 }
   0xa   : > { %s3517_s27 = scalar_select %p140_p1, %s3431_s20, %s142_s25  }
   0xb   : > { %p3519_p5 = por %p153_p2, %p152_p0  ;;  %p3523_p6 = por %p159_p4, %p158_p3 }
   0xc   : > { %p2443_p7 = scmp.ge.s32.totalorder %s3435_s21, 1  ;;  %p166_p8 = scmp.lt.s32.totalorder %s3435_s21, 3 }
   0xd   : > { %s4564_s29 = scalar_select %p3523_p6, 1, 0 }
   0xe   : > { %p4562_p9 = scmp.eq.s32.totalorder %s3502_s22, 0  ;;  %p3530_p10 = pnand %p2443_p7, %p166_p8 }
   0xf   : > { %s3437_s6 = smov [#allocation5]   ;;  %s3438_s9 = smov [#allocation2]  }
  0x10   : > { %s191_s7 = sshll.u32 %s3437_s6, 4  ;;  %p2869_p11 = pneg %p3530_p10  ;;  %s192_s7 = int_to_ptr.vmem [resolvable:$true] %s191_s7 }
  0x11   : > { %s178_s10 = sshll.u32 %s3438_s9, 4  ;;  %s3300_s11 = scalar_lea.vmem %s192_s7, 4096  ;;  %s179_s10 = int_to_ptr.vmem [resolvable:$true] %s178_s10 }
  0x12   : > { %p3538_p12 = pnand %p4562_p9, %p2869_p11  ;;  %p3301_p0 = scmp.ne.s32.totalorder %s192_s7, %s3300_s11 }
  0x13   : > { %p3308_p3 = scmp.lt.s32.totalorder %s192_s7, %s192_s7  ;;  %p3309_p4 = scmp.lt.s32.totalorder %s3300_s11, %s3300_s11 }
  0x14   : > { %p3291_p13 = pneg %p3538_p12 }
  0x15   : > { %p3310_p7 = por %p3309_p4, %p3308_p3 }
  0x16   : > { %p3303_p1 = pnand %p3301_p0, %p3291_p13 }
  0x18   : > { %p3304_p2 = pneg %p3303_p1 }
  0x1a   : > { %p3311_p8 = pnand %p3310_p7, %p3304_p2 }
  0x1c   : > { %3314 = shalt.err (!%p3311_p8)
}
  0x1d   : > { %s3439_s12 = smov 256   ;;  %s3440_s13 = smov 16  }
  0x1e   : > { %2875 = dma.hbm_to_vmem [thread:$0]  (!%p3538_p12), %s4559_s3, 4096, %s192_s7, [#allocation6], %s3439_s12, %s3439_s12, %s3440_s13  }
  0x1f   : > { %s3326_s16 = scalar_lea.vmem %s179_s10, 3072  ;;  %p3334_p9 = scmp.lt.s32.totalorder %s179_s10, %s179_s10 }
  0x20   : > { %p3327_p11 = scmp.ne.s32.totalorder %s179_s10, %s3326_s16  ;;  %p3335_p6 = scmp.lt.s32.totalorder %s3326_s16, %s3326_s16 }
  0x22   : > { %p3329_p0 = pnand %p3327_p11, %p3291_p13  ;;  %p3336_p3 = por %p3335_p6, %p3334_p9 }
  0x24   : > { %p3330_p1 = pneg %p3329_p0 }
  0x26   : > { %p3337_p2 = pnand %p3336_p3, %p3330_p1 }
  0x28   : > { %3340 = shalt.err (!%p3337_p2)
}
  0x29   : > { %s3441_s17 = smov 384   ;;  %s3442_s23 = smov 24  }
  0x2a   : > { %2872 = dma.hbm_to_vmem [thread:$0]  (!%p3538_p12), %s4558_s2, 3072, %s179_s10, [#allocation3], %s3441_s17, %s3441_s17, %s3442_s23  }
  0x2b   : > { %s3443_s6 = smov [#allocation7]  }
  0x2c   : > { %s204_s7 = sshll.u32 %s3443_s6, 4  ;;  %s205_s7 = int_to_ptr.vmem [resolvable:$true] %s204_s7 }
  0x2d   : > { %s3352_s9 = scalar_lea.vmem %s205_s7, 2048  ;;  %p3360_p9 = scmp.lt.s32.totalorder %s205_s7, %s205_s7 }
  0x2e   : > { %p3353_p4 = scmp.ne.s32.totalorder %s205_s7, %s3352_s9  ;;  %p3361_p8 = scmp.lt.s32.totalorder %s3352_s9, %s3352_s9 }
  0x30   : > { %p3355_p7 = pnand %p3353_p4, %p3291_p13  ;;  %p3362_p11 = por %p3361_p8, %p3360_p9 }
  0x32   : > { %p3356_p6 = pneg %p3355_p7 }
  0x34   : > { %p3363_p0 = pnand %p3362_p11, %p3356_p6 }
  0x36   : > { %3366 = shalt.err (!%p3363_p0)
}
  0x37   : > { %s3444_s11 = smov 128   ;;  %s3445_s12 = smov 8  }
  0x38   : > { %2878 = dma.hbm_to_vmem [thread:$0]  (!%p3538_p12), %s4560_s4, 2048, %s205_s7, [#allocation6], %s3444_s11, %s3444_s11, %s3445_s12  }
  0x39   : > { %238 = sbr.rel (%p3530_p10) target bundleno = 854 (0x356), region = 40 }
  0x3e   : > { %p4567_p1 = scmp.eq.s32.totalorder %s3502_s22, 0 }
  0x40   : > { %3410 = dma.done.wait (%p4567_p1), [#allocation3], 3072   ;;  %p4568_p13 = pmov %p4567_p1 }
  0x41   : > { %p4569_p3 = pmov %p4567_p1 }
  0x42   : > { %3412 = vsyncadd (%p4568_p13), [#allocation3], 4294964224 }
  0x43   : > { %3414 = dma.done.wait (%p4569_p3), [#allocation6], 6144   ;;  %p4570_p2 = pmov %p4567_p1 }
  0x44   : > { %s2453_s8 = sshll.u32 %s3502_s22, 5  ;;  %v3446_v0 = vmov 0   ;;  %v3447_v1 = vmov 0.0   ;;  %v540_v10 = vld [vmem:[#allocation2 + $0xb0] sm:$0xff]  ;;  %v539_v11 = vld [vmem:[#allocation2 + $0xa8] sm:$0xff]  ;;  %v537_v12 = vld [vmem:[#allocation2 + $0x98] sm:$0xff]  ;;  %v324_v59 = vlaneseq }
  0x45   : > { %3416 = vsyncadd (%p4570_p2), [#allocation6], 4294961152  ;;  %2936 = vset.pattern.permute.xlu1 %v3446_v0  ;;  %2935 = vset.pattern.permute.xlu0 %v3446_v0  ;;  %p280_p12 = scmp.lt.s32.totalorder %s2453_s8, 63  ;;  %v536_v13 = vld [vmem:[#allocation2 + $0x90] sm:$0xff]  ;;  %v541_v14 = vld [vmem:[#allocation2 + $0xb8] sm:$0xff]  ;;  %vm542_vm0 = vcmask 523264  }
  0x46   : > { %703 = vmatprep.mubr.f32.mxu0 %v3447_v1  ;;  %655 = vmatprep.subr.mxu0 %v540_v10  ;;  %v534_v15 = vld [vmem:[#allocation2 + $0x80] sm:$0xff]  ;;  %v533_v19 = vld [vmem:[#allocation2 + $0x78] sm:$0xff]  ;;  %v531_v20 = vld [vmem:[#allocation2 + $0x68] sm:$0xff]  ;;  %v3622_v60 = vand.u32 127, %v324_v59  ;;  %s276_s26 = sand.u32 1, %s3427_s19   ;;  %s2622_s9 = sshll.u32 %s3502_s22, 12 }
  0x47   : > { %s4691_s8 = smov (!%p280_p12, %s2453_s8), 63  ;;  %656 = vmatpush1.msra.mxu0 %v539_v11  ;;  %v538_v16 = vld [vmem:[#allocation2 + $0xa0] sm:$0xff]  ;;  %2711 = vmatprep.subr.mxu1 %v541_v14  ;;  %v535_v21 = vld [vmem:[#allocation2 + $0x88] sm:$0xff]  ;;  %v528_v25 = vld [vmem:[#allocation2 + $0x50] sm:$0xff]  ;;  %s2452_s6 = sshll.u32 %s276_s26, 8 }
  0x48   : > { %s2454_s30 = sshll.u32 %s4691_s8, 3  ;;  %657 = vmatprep.subr.mxu0 %v537_v12  ;;  %2712 = vmatpush3.msra.mxu1 %v541_v14  ;;  %v530_v22 = vld [vmem:[#allocation2 + $0x60] sm:$0xff]  ;;  %v532_v26 = vld [vmem:[#allocation2 + $0x70] sm:$0xff]  ;;  %v527_v27 = vld [vmem:[#allocation2 + $0x48] sm:$0xff]  ;;  %s4376_s7 = scalar_lea.vmem [#allocation8], %s2452_s6 }
  0x49   : > { %s3588_s16 = scalar_lea.vmem %s4556_s0, %s2454_s30  ;;  %658 = vmatpush1.msra.mxu0 %v536_v13  ;;  %2713 = vmatprep.subr.mxu1 %v538_v16  ;;  %v525_v28 = vld [vmem:[#allocation2 + $0x38] sm:$0xff]  ;;  %v524_v32 = vld [vmem:[#allocation2 + $0x30] sm:$0xff]  ;;  %v522_v33 = vld [vmem:[#allocation2 + $0x20] sm:$0xff]  ;;  %s3824_s25 = scalar_lea.vmem %s4557_s1, %s2454_s30 }
  0x4a   : > { %v294_v2 = vld [vmem:[%s3588_s16 + $0x10] sm:$0xff]  ;;  %v292_v3 = vld [vmem:[%s3588_s16] sm:$0xff]  ;;  %v295_v4 = vld [vmem:[%s3588_s16 + $0x18] sm:$0xff]  ;;  %659 = vmatprep.subr.mxu0 %v534_v15  ;;  %2714 = vmatpush3.msra.mxu1 %v538_v16  ;;  %s2337_s11 = sshll.u32 %s4376_s7, 4  ;;  %s4508_s10 = scalar_lea.hbm %s4561_s5, %s2622_s9  ;;  %s4510_s11 = int_to_ptr.vmem [resolvable:$true] %s2337_s11 }
  0x4b   : > { %333 = vperm.xlu1 %2936, %v294_v2   ;;  %327 = vperm.xlu0 %2935, %v292_v3   ;;  %v293_v5 = vld [vmem:[%s3588_s16 + $0x8] sm:$0xff]  ;;  %v296_v7 = vld [vmem:[%s3588_s16 + $0x20] sm:$0xff]  ;;  %v299_v8 = vld [vmem:[%s3588_s16 + $0x38] sm:$0xff]  ;;  %s4516_s8 = scalar_lea.sflag [#allocation4], %s276_s26  ;;  %s3367_s22 = scalar_lea.vmem %s4510_s11, 4096 }
  0x4c   : > { %v297_v6 = vld [vmem:[%s3588_s16 + $0x28] sm:$0xff]  ;;  %v298_v9 = vld [vmem:[%s3588_s16 + $0x30] sm:$0xff]  ;;  %v300_v18 = vld [vmem:[%s3588_s16 + $0x40] sm:$0xff]  ;;  %660 = vmatpush1.msra.mxu0 %v533_v19  ;;  %2715 = vmatprep.subr.mxu1 %v535_v21  ;;  %p3368_p10 = scmp.ne.s32.totalorder %s4510_s11, %s3367_s22  ;;  %s3448_s30 = smov [#allocation8]  }
  0x4d   : > { %v301_v17 = vld [vmem:[%s3588_s16 + $0x48] sm:$0xff]  ;;  %v303_v23 = vld [vmem:[%s3588_s16 + $0x58] sm:$0xff]  ;;  %v302_v24 = vld [vmem:[%s3588_s16 + $0x50] sm:$0xff]  ;;  %661 = vmatprep.subr.mxu0 %v531_v20  ;;  %2716 = vmatpush3.msra.mxu1 %v535_v21  ;;  %s3371_s14 = sshll.u32 %s3448_s30, 4  ;;  %s3372_s14 = int_to_ptr.vmem [resolvable:$false] %s3371_s14 }
  0x4e   : > { %662 = vmatpush1.msra.mxu0 %v530_v22  ;;  %v529_v29 = vld [vmem:[#allocation2 + $0x58] sm:$0xff]  ;;  %v305_v30 = vld [vmem:[%s3588_s16 + $0x68] sm:$0xff]  ;;  %v304_v31 = vld [vmem:[%s3588_s16 + $0x60] sm:$0xff]  ;;  %2717 = vmatprep.subr.mxu1 %v532_v26  ;;  %p3369_p4 = pnand %p3368_p10, %p3519_p5  ;;  %s3373_s15 = scalar_lea.vmem %s3372_s14, 8192 }
  0x4f   : > { %336 = vperm.xlu1 %2936, %v295_v4   ;;  %330 = vperm.xlu0 %2935, %v293_v5   ;;  %v526_v34 = vld [vmem:[#allocation2 + $0x40] sm:$0xff]  ;;  %v521_v35 = vld [vmem:[#allocation2 + $0x18] sm:$0xff]  ;;  %v306_v37 = vld [vmem:[%s3588_s16 + $0x70] sm:$0xff]  ;;  %p3374_p6 = scmp.lt.s32.totalorder %s4510_s11, %s3372_s14  ;;  %p3375_p9 = scmp.lt.s32.totalorder %s3373_s15, %s3367_s22 }
  0x50   : > { %663 = vmatprep.subr.mxu0 %v528_v25  ;;  %2718 = vmatpush3.msra.mxu1 %v532_v26  ;;  %v307_v36 = vld [vmem:[%s3588_s16 + $0x78] sm:$0xff]  ;;  %v519_v38 = vld [vmem:[#allocation2 + $0x8] sm:$0xff]  ;;  %v518_v40 = vld [vmem:[#allocation2] sm:$0xff]  ;;  %p3370_p7 = pneg %p3369_p4 }
  0x51   : > { %664 = vmatpush1.msra.mxu0 %v527_v27  ;;  %2719 = vmatprep.subr.mxu1 %v529_v29  ;;  %v523_v39 = vld [vmem:[#allocation2 + $0x28] sm:$0xff]  ;;  %v520_v41 = vld [vmem:[#allocation2 + $0x10] sm:$0xff]  ;;  %v308_v43 = vld [vmem:[%s3588_s16 + $0x80] sm:$0xff]  ;;  %p3376_p8 = por %p3375_p9, %p3374_p6 }
  0x52   : > { %665 = vmatprep.subr.mxu0 %v525_v28  ;;  %2720 = vmatpush3.msra.mxu1 %v529_v29  ;;  %v309_v42 = vld [vmem:[%s3588_s16 + $0x88] sm:$0xff]  ;;  %v1184_v44 = vld [vmem:[#allocation5 + $0xf8] sm:$0xff]  ;;  %v310_v46 = vld [vmem:[%s3588_s16 + $0x90] sm:$0xff] }
  0x53   : > { %342 = vperm.xlu1 %2936, %v297_v6   ;;  %339 = vperm.xlu0 %2935, %v296_v7   ;;  %v311_v45 = vld [vmem:[%s3588_s16 + $0x98] sm:$0xff]  ;;  %v313_v47 = vld [vmem:[%s3588_s16 + $0xa8] sm:$0xff]  ;;  %v312_v48 = vld [vmem:[%s3588_s16 + $0xa0] sm:$0xff]  ;;  %p3377_p11 = pnand %p3376_p8, %p3370_p7 }
  0x54   : > { %666 = vmatpush1.msra.mxu0 %v524_v32  ;;  %2721 = vmatprep.subr.mxu1 %v526_v34  ;;  %v315_v49 = vld [vmem:[%s3588_s16 + $0xb8] sm:$0xff]  ;;  %v314_v50 = vld [vmem:[%s3588_s16 + $0xb0] sm:$0xff]  ;;  %v317_v51 = vld [vmem:[%s3588_s16 + $0xc8] sm:$0xff] }
  0x55   : > { %667 = vmatprep.subr.mxu0 %v522_v33  ;;  %2722 = vmatpush3.msra.mxu1 %v526_v34  ;;  %v316_v52 = vld [vmem:[%s3588_s16 + $0xc0] sm:$0xff]  ;;  %v319_v53 = vld [vmem:[%s3588_s16 + $0xd8] sm:$0xff]  ;;  %v318_v54 = vld [vmem:[%s3588_s16 + $0xd0] sm:$0xff] }
  0x56   : > { %668 = vmatpush1.msra.mxu0 %v521_v35  ;;  %2723 = vmatprep.subr.mxu1 %v523_v39  ;;  %v321_v55 = vld [vmem:[%s3588_s16 + $0xe8] sm:$0xff]  ;;  %v320_v56 = vld [vmem:[%s3588_s16 + $0xe0] sm:$0xff]  ;;  %v323_v57 = vld [vmem:[%s3588_s16 + $0xf8] sm:$0xff] }
  0x57   : > { %348 = vperm.xlu1 %2936, %v299_v8   ;;  %345 = vperm.xlu0 %2935, %v298_v9   ;;  %v322_v58 = vld [vmem:[%s3588_s16 + $0xf0] sm:$0xff]  ;;  %v1182_v6 = vld [vmem:[#allocation5 + $0xe8] sm:$0xff]  ;;  %v1181_v7 = vld [vmem:[#allocation5 + $0xe0] sm:$0xff] }
  0x58   : > { %669 = vmatprep.subr.mxu0 %v519_v38  ;;  %2724 = vmatpush3.msra.mxu1 %v523_v39  ;;  %v1183_v4 = vld [vmem:[#allocation5 + $0xf0] sm:$0xff]  ;;  %v1180_v12 = vld [vmem:[#allocation5 + $0xd8] sm:$0xff]  ;;  %v1177_v19 = vld [vmem:[#allocation5 + $0xc0] sm:$0xff] }
  0x59   : > { %670 = vmatpush1.msra.mxu0 %v518_v40  ;;  %2725 = vmatprep.subr.mxu1 %v520_v41  ;;  %v1179_v13 = vld [vmem:[#allocation5 + $0xd0] sm:$0xff] }
  0x5a   : > { %2726 = vmatpush3.msra.mxu1 %v520_v41  ;;  %v1175_v25 = vld [vmem:[#allocation5 + $0xb0] sm:$0xff] }
  0x5b   : > { %354 = vperm.xlu1 %2936, %v301_v17   ;;  %351 = vperm.xlu0 %2935, %v300_v18   ;;  %v1178_v18 = vld [vmem:[#allocation5 + $0xc8] sm:$0xff] }
  0x5c   : > { %1185 = vmatprep.subr.mxu1 %v1184_v44 }
  0x5f   : > { %360 = vperm.xlu1 %2936, %v303_v23   ;;  %357 = vperm.xlu0 %2935, %v302_v24   ;;  %v1176_v24 = vld [vmem:[#allocation5 + $0xb8] sm:$0xff] }
  0x63   : > { %366 = vperm.xlu1 %2936, %v305_v30   ;;  %363 = vperm.xlu0 %2935, %v304_v31   ;;  %v1174_v30 = vld [vmem:[#allocation5 + $0xa8] sm:$0xff]  ;;  %v1173_v31 = vld [vmem:[#allocation5 + $0xa0] sm:$0xff] }
  0x67   : > { %372 = vperm.xlu1 %2936, %v307_v36   ;;  %369 = vperm.xlu0 %2935, %v306_v37   ;;  %v1172_v36 = vld [vmem:[#allocation5 + $0x98] sm:$0xff]  ;;  %v1171_v37 = vld [vmem:[#allocation5 + $0x90] sm:$0xff] }
  0x6b   : > { %378 = vperm.xlu1 %2936, %v309_v42   ;;  %375 = vperm.xlu0 %2935, %v308_v43   ;;  %v1170_v42 = vld [vmem:[#allocation5 + $0x88] sm:$0xff]  ;;  %v1169_v43 = vld [vmem:[#allocation5 + $0x80] sm:$0xff] }
  0x6f   : > { %384 = vperm.xlu1 %2936, %v311_v45   ;;  %381 = vperm.xlu0 %2935, %v310_v46  }
  0x73   : > { %390 = vperm.xlu1 %2936, %v313_v47   ;;  %387 = vperm.xlu0 %2935, %v312_v48   ;;  %v1168_v48 = vld [vmem:[#allocation5 + $0x78] sm:$0xff] }
  0x77   : > { %396 = vperm.xlu1 %2936, %v315_v49   ;;  %393 = vperm.xlu0 %2935, %v314_v50   ;;  %v1167_v49 = vld [vmem:[#allocation5 + $0x70] sm:$0xff] }
  0x7b   : > { %402 = vperm.xlu1 %2936, %v317_v51   ;;  %399 = vperm.xlu0 %2935, %v316_v52  }
  0x7f   : > { %408 = vperm.xlu1 %2936, %v319_v53   ;;  %405 = vperm.xlu0 %2935, %v318_v54   ;;  %v1166_v54 = vld [vmem:[#allocation5 + $0x68] sm:$0xff] }
  0x83   : > { %414 = vperm.xlu1 %2936, %v321_v55   ;;  %411 = vperm.xlu0 %2935, %v320_v56   ;;  %v1165_v55 = vld [vmem:[#allocation5 + $0x60] sm:$0xff] }
  0x87   : > { %420 = vperm.xlu1 %2936, %v323_v57   ;;  %417 = vperm.xlu0 %2935, %v322_v58  }
  0xc6   : > { %v334_v61 = vpop.permute.xlu1 %333  ;;  %v328_v62 = vpop.permute.xlu0 %327 }
  0xc7   : > { %vm422_vm1 = vcmp.eq.s32.totalorder %v328_v62, %v3622_v60  ;;  %vm424_vm2 = vcmp.eq.s32.totalorder %v334_v61, %v3622_v60  ;;  %v1164_v61 = vld [vmem:[#allocation5 + $0x58] sm:$0xff]  ;;  %v1163_v62 = vld [vmem:[#allocation5 + $0x50] sm:$0xff] }
  0xc8   : > { %v2457_v63 = vsel %vm422_vm1, 1.0, %v3447_v1  ;;  %v2459_v3 = vsel %vm424_vm2, 1.0, %v3447_v1 }
  0xc9   : > { %2489 = vmatmul.mubr.msk.f32.vlgmr.msra.gmra.mxu0 %vm542_vm0, %v2457_v63  ;;  %2727 = vmatprep.mubr.msk.f32.mxu1 %vm542_vm0, %v2457_v63 }
  0xca   : > { %v337_v0 = vpop.permute.xlu1 %336  ;;  %v331_v2 = vpop.permute.xlu0 %330  ;;  %709 = vmatprep.mubr.f32.mxu0 %v3447_v1 }
  0xcb   : > { %vm423_vm3 = vcmp.eq.s32.totalorder %v331_v2, %v3622_v60  ;;  %vm425_vm4 = vcmp.eq.s32.totalorder %v337_v0, %v3622_v60 }
  0xcc   : > { %v2458_v5 = vsel %vm423_vm3, 1.0, %v3447_v1  ;;  %v2460_v10 = vsel %vm425_vm4, 1.0, %v3447_v1 }
  0xcd   : > { %2490 = vmatmul.mubr.msk.f32.gmra.mxu0 %vm542_vm0, %v2458_v5  ;;  %2728 = vmatmul.mubr.msk.f32.vlgmr.msra.gmra.mxu1 %vm542_vm0, %v2458_v5  ;;  %v1161_v5 = vld [vmem:[#allocation5 + $0x40] sm:$0xff] }
  0xce   : > { %1186 = vmatpush1.msra.mxu1 %v1183_v4  ;;  %v343_v8 = vpop.permute.xlu1 %342  ;;  %2730 = vmatprep.mubr.msk.f32.mxu1 %vm542_vm0, %v2459_v3  ;;  %v340_v9 = vpop.permute.xlu0 %339  ;;  %v1162_v4 = vld [vmem:[#allocation5 + $0x48] sm:$0xff] }
  0xcf   : > { %vm426_vm5 = vcmp.eq.s32.totalorder %v340_v9, %v3622_v60  ;;  %715 = vmatprep.mubr.f32.mxu0 %v3447_v1  ;;  %1187 = vmatprep.subr.mxu1 %v1182_v6  ;;  %vm427_vm6 = vcmp.eq.s32.totalorder %v343_v8, %v3622_v60 }
  0xd0   : > { %v2461_v11 = vsel %vm426_vm5, 1.0, %v3447_v1  ;;  %1188 = vmatpush1.msra.mxu1 %v1181_v7  ;;  %v2462_v16 = vsel %vm427_vm6, 1.0, %v3447_v1 }
  0xd1   : > { %2491 = vmatmul.mubr.msk.f32.gmra.mxu0 %vm542_vm0, %v2459_v3  ;;  %2731 = vmatmul.mubr.msk.f32.gmra.mxu1 %vm542_vm0, %v2460_v10 }
  0xd2   : > { %v349_v14 = vpop.permute.xlu1 %348  ;;  %2733 = vmatprep.mubr.msk.f32.mxu1 %vm542_vm0, %v2461_v11  ;;  %v346_v15 = vpop.permute.xlu0 %345  ;;  %721 = vmatprep.mubr.f32.mxu0 %v3447_v1 }
  0xd3   : > { %vm428_vm7 = vcmp.eq.s32.totalorder %v346_v15, %v3622_v60  ;;  %1189 = vmatprep.subr.mxu1 %v1180_v12  ;;  %vm429_vm8 = vcmp.eq.s32.totalorder %v349_v14, %v3622_v60 }
  0xd4   : > { %v2463_v17 = vsel %vm428_vm7, 1.0, %v3447_v1  ;;  %1190 = vmatpush1.msra.mxu1 %v1179_v13  ;;  %v2464_v22 = vsel %vm429_vm8, 1.0, %v3447_v1 }
  0xd5   : > { %2492 = vmatmul.mubr.msk.f32.gmra.mxu0 %vm542_vm0, %v2460_v10  ;;  %2734 = vmatmul.mubr.msk.f32.gmra.mxu1 %vm542_vm0, %v2462_v16  ;;  %v1160_v10 = vld [vmem:[#allocation5 + $0x38] sm:$0xff] }
  0xd6   : > { %v355_v20 = vpop.permute.xlu1 %354  ;;  %2736 = vmatprep.mubr.msk.f32.mxu1 %vm542_vm0, %v2463_v17  ;;  %v352_v21 = vpop.permute.xlu0 %351  ;;  %727 = vmatprep.mubr.f32.mxu0 %v3447_v1 }
  0xd7   : > { %vm430_vm9 = vcmp.eq.s32.totalorder %v352_v21, %v3622_v60  ;;  %1191 = vmatprep.subr.mxu1 %v1178_v18  ;;  %vm431_vm10 = vcmp.eq.s32.totalorder %v355_v20, %v3622_v60 }
  0xd8   : > { %v2465_v23 = vsel %vm430_vm9, 1.0, %v3447_v1  ;;  %1192 = vmatpush1.msra.mxu1 %v1177_v19  ;;  %v2466_v28 = vsel %vm431_vm10, 1.0, %v3447_v1 }
  0xd9   : > { %2493 = vmatmul.mubr.msk.f32.gmra.mxu0 %vm542_vm0, %v2461_v11  ;;  %2737 = vmatmul.mubr.msk.f32.gmra.mxu1 %vm542_vm0, %v2464_v22  ;;  %v1159_v11 = vld [vmem:[#allocation5 + $0x30] sm:$0xff] }
  0xda   : > { %v361_v26 = vpop.permute.xlu1 %360  ;;  %2739 = vmatprep.mubr.msk.f32.mxu1 %vm542_vm0, %v2465_v23  ;;  %v358_v27 = vpop.permute.xlu0 %357  ;;  %733 = vmatprep.mubr.f32.mxu0 %v3447_v1 }
  0xdb   : > { %vm432_vm11 = vcmp.eq.s32.totalorder %v358_v27, %v3622_v60  ;;  %1193 = vmatprep.subr.mxu1 %v1176_v24  ;;  %vm433_vm12 = vcmp.eq.s32.totalorder %v361_v26, %v3622_v60 }
  0xdc   : > { %v3665_v29 = vsel %vm432_vm11, 1.0, %v3447_v1  ;;  %1194 = vmatpush1.msra.mxu1 %v1175_v25  ;;  %v3675_v34 = vsel %vm433_vm12, 1.0, %v3447_v1 }
  0xdd   : > { %2494 = vmatmul.mubr.msk.f32.gmra.mxu0 %vm542_vm0, %v2462_v16  ;;  %2740 = vmatmul.mubr.msk.f32.gmra.mxu1 %vm542_vm0, %v2466_v28  ;;  %v1158_v16 = vld [vmem:[#allocation5 + $0x28] sm:$0xff] }
  0xde   : > { %v367_v32 = vpop.permute.xlu1 %366  ;;  %2742 = vmatprep.mubr.msk.f32.mxu1 %vm542_vm0, %v3665_v29  ;;  %v364_v33 = vpop.permute.xlu0 %363  ;;  %739 = vmatprep.mubr.f32.mxu0 %v3447_v1 }
  0xdf   : > { %vm434_vm13 = vcmp.eq.s32.totalorder %v364_v33, %v3622_v60  ;;  %1195 = vmatprep.subr.mxu1 %v1174_v30  ;;  %vm435_vm14 = vcmp.eq.s32.totalorder %v367_v32, %v3622_v60  ;;  %v3836_v30 = vld [vmem:[%s3824_s25] sm:$0xff]  ;;  %v3852_v32 = vld [vmem:[%s3824_s25 + $0x10] sm:$0xff]  ;;  %v3860_v33 = vld [vmem:[%s3824_s25 + $0x18] sm:$0xff] }
  0xe0   : > { %v3678_v35 = vsel %vm434_vm13, 1.0, %v3447_v1  ;;  %1196 = vmatpush1.msra.mxu1 %v1173_v31  ;;  %v3689_v40 = vsel %vm435_vm14, 1.0, %v3447_v1  ;;  %v3844_v31 = vld [vmem:[%s3824_s25 + $0x8] sm:$0xff] }
  0xe1   : > { %2495 = vmatmul.mubr.msk.f32.gmra.mxu0 %vm542_vm0, %v2463_v17  ;;  %2743 = vmatmul.mubr.msk.f32.gmra.mxu1 %vm542_vm0, %v3675_v34  ;;  %v1157_v17 = vld [vmem:[#allocation5 + $0x20] sm:$0xff] }
  0xe2   : > { %v373_v38 = vpop.permute.xlu1 %372  ;;  %2745 = vmatprep.mubr.msk.f32.mxu1 %vm542_vm0, %v3678_v35  ;;  %v370_v39 = vpop.permute.xlu0 %369  ;;  %745 = vmatprep.mubr.f32.mxu0 %v3447_v1 }
  0xe3   : > { %vm436_vm15 = vcmp.eq.s32.totalorder %v370_v39, %v3622_v60  ;;  %1197 = vmatprep.subr.mxu1 %v1172_v36  ;;  %vm437_vm1 = vcmp.eq.s32.totalorder %v373_v38, %v3622_v60  ;;  %v3884_v36 = vld [vmem:[%s3824_s25 + $0x30] sm:$0xff]  ;;  %v3900_v38 = vld [vmem:[%s3824_s25 + $0x40] sm:$0xff]  ;;  %v3908_v39 = vld [vmem:[%s3824_s25 + $0x48] sm:$0xff] }
  0xe4   : > { %v3692_v41 = vsel %vm436_vm15, 1.0, %v3447_v1  ;;  %1198 = vmatpush1.msra.mxu1 %v1171_v37  ;;  %v3703_v46 = vsel %vm437_vm1, 1.0, %v3447_v1  ;;  %v3892_v37 = vld [vmem:[%s3824_s25 + $0x38] sm:$0xff] }
  0xe5   : > { %2496 = vmatmul.mubr.msk.f32.gmra.mxu0 %vm542_vm0, %v2464_v22  ;;  %2746 = vmatmul.mubr.msk.f32.gmra.mxu1 %vm542_vm0, %v3689_v40  ;;  %v1156_v22 = vld [vmem:[#allocation5 + $0x18] sm:$0xff] }
  0xe6   : > { %v379_v44 = vpop.permute.xlu1 %378  ;;  %2748 = vmatprep.mubr.msk.f32.mxu1 %vm542_vm0, %v3692_v41  ;;  %v376_v45 = vpop.permute.xlu0 %375  ;;  %751 = vmatprep.mubr.f32.mxu0 %v3447_v1 }
  0xe7   : > { %vm438_vm2 = vcmp.eq.s32.totalorder %v376_v45, %v3622_v60  ;;  %1199 = vmatprep.subr.mxu1 %v1170_v42  ;;  %vm439_vm3 = vcmp.eq.s32.totalorder %v379_v44, %v3622_v60  ;;  %v3924_v42 = vld [vmem:[%s3824_s25 + $0x58] sm:$0xff]  ;;  %v3932_v44 = vld [vmem:[%s3824_s25 + $0x60] sm:$0xff]  ;;  %v3940_v45 = vld [vmem:[%s3824_s25 + $0x68] sm:$0xff] }
  0xe8   : > { %v3706_v47 = vsel %vm438_vm2, 1.0, %v3447_v1  ;;  %1200 = vmatpush1.msra.mxu1 %v1169_v43  ;;  %v3717_v52 = vsel %vm439_vm3, 1.0, %v3447_v1  ;;  %v1936_v43 = vld [vmem:[#allocation7 + $0x70] sm:$0xff] }
  0xe9   : > { %2497 = vmatmul.mubr.msk.f32.gmra.mxu0 %vm542_vm0, %v2465_v23  ;;  %2749 = vmatmul.mubr.msk.f32.gmra.mxu1 %vm542_vm0, %v3703_v46  ;;  %v1155_v23 = vld [vmem:[#allocation5 + $0x10] sm:$0xff] }
  0xea   : > { %v385_v50 = vpop.permute.xlu1 %384  ;;  %2751 = vmatprep.mubr.msk.f32.mxu1 %vm542_vm0, %v3706_v47  ;;  %v382_v51 = vpop.permute.xlu0 %381  ;;  %757 = vmatprep.mubr.f32.mxu0 %v3447_v1 }
  0xeb   : > { %vm440_vm4 = vcmp.eq.s32.totalorder %v382_v51, %v3622_v60  ;;  %1201 = vmatprep.subr.mxu1 %v1168_v48  ;;  %vm441_vm5 = vcmp.eq.s32.totalorder %v385_v50, %v3622_v60  ;;  %v3955_v48 = vld [vmem:[%s3824_s25 + $0x78] sm:$0xff]  ;;  %v3960_v50 = vld [vmem:[%s3824_s25 + $0x80] sm:$0xff]  ;;  %v3965_v51 = vld [vmem:[%s3824_s25 + $0x88] sm:$0xff] }
  0xec   : > { %v3720_v53 = vsel %vm440_vm4, 1.0, %v3447_v1  ;;  %1202 = vmatpush1.msra.mxu1 %v1167_v49  ;;  %v3731_v58 = vsel %vm441_vm5, 1.0, %v3447_v1  ;;  %v1934_v49 = vld [vmem:[#allocation7 + $0x60] sm:$0xff] }
  0xed   : > { %2498 = vmatmul.mubr.msk.f32.gmra.mxu0 %vm542_vm0, %v2466_v28  ;;  %2752 = vmatmul.mubr.msk.f32.gmra.mxu1 %vm542_vm0, %v3717_v52  ;;  %v1154_v28 = vld [vmem:[#allocation5 + $0x8] sm:$0xff] }
  0xee   : > { %v391_v56 = vpop.permute.xlu1 %390  ;;  %2754 = vmatprep.mubr.msk.f32.mxu1 %vm542_vm0, %v3720_v53  ;;  %v388_v57 = vpop.permute.xlu0 %387  ;;  %763 = vmatprep.mubr.f32.mxu0 %v3447_v1 }
  0xef   : > { %vm442_vm6 = vcmp.eq.s32.totalorder %v388_v57, %v3622_v60  ;;  %1203 = vmatprep.subr.mxu1 %v1166_v54  ;;  %vm443_vm7 = vcmp.eq.s32.totalorder %v391_v56, %v3622_v60  ;;  %v3980_v54 = vld [vmem:[%s3824_s25 + $0xa0] sm:$0xff]  ;;  %v3985_v56 = vld [vmem:[%s3824_s25 + $0xa8] sm:$0xff]  ;;  %v1932_v57 = vld [vmem:[#allocation7 + $0x50] sm:$0xff] }
  0xf0   : > { %v3734_v59 = vsel %vm442_vm6, 1.0, %v3447_v1  ;;  %1204 = vmatpush1.msra.mxu1 %v1165_v55  ;;  %v3746_v2 = vsel %vm443_vm7, 1.0, %v3447_v1  ;;  %v1933_v55 = vld [vmem:[#allocation7 + $0x58] sm:$0xff] }
  0xf1   : > { %2499 = vmatmul.mubr.msk.f32.gmra.mxu0 %vm542_vm0, %v3665_v29  ;;  %2755 = vmatmul.mubr.msk.f32.gmra.mxu1 %vm542_vm0, %v3731_v58  ;;  %v1153_v29 = vld [vmem:[#allocation5] sm:$0xff] }
  0xf2   : > { %v397_v63 = vpop.permute.xlu1 %396  ;;  %2757 = vmatprep.mubr.msk.f32.mxu1 %vm542_vm0, %v3734_v59  ;;  %v394_v0 = vpop.permute.xlu0 %393  ;;  %769 = vmatprep.mubr.f32.mxu0 %v3447_v1 }
  0xf3   : > { %vm444_vm8 = vcmp.eq.s32.totalorder %v394_v0, %v3622_v60  ;;  %1205 = vmatprep.subr.mxu1 %v1164_v61  ;;  %vm445_vm9 = vcmp.eq.s32.totalorder %v397_v63, %v3622_v60  ;;  %v1930_v61 = vld [vmem:[#allocation7 + $0x40] sm:$0xff]  ;;  %v1929_v63 = vld [vmem:[#allocation7 + $0x38] sm:$0xff]  ;;  %v1928_v0 = vld [vmem:[#allocation7 + $0x30] sm:$0xff] }
  0xf4   : > { %v3749_v3 = vsel %vm444_vm8, 1.0, %v3447_v1  ;;  %1206 = vmatpush1.msra.mxu1 %v1163_v62  ;;  %v3761_v8 = vsel %vm445_vm9, 1.0, %v3447_v1  ;;  %v3995_v62 = vld [vmem:[%s3824_s25 + $0xb8] sm:$0xff] }
  0xf5   : > { %2500 = vmatmul.mubr.msk.f32.gmra.mxu0 %vm542_vm0, %v3675_v34  ;;  %2758 = vmatmul.mubr.msk.f32.gmra.mxu1 %vm542_vm0, %v3746_v2  ;;  %v3868_v34 = vld [vmem:[%s3824_s25 + $0x20] sm:$0xff] }
  0xf6   : > { %v403_v6 = vpop.permute.xlu1 %402  ;;  %2760 = vmatprep.mubr.msk.f32.mxu1 %vm542_vm0, %v3749_v3  ;;  %v400_v7 = vpop.permute.xlu0 %399  ;;  %775 = vmatprep.mubr.f32.mxu0 %v3447_v1 }
  0xf7   : > { %vm446_vm10 = vcmp.eq.s32.totalorder %v400_v7, %v3622_v60  ;;  %1207 = vmatprep.subr.mxu1 %v1162_v4  ;;  %vm447_vm11 = vcmp.eq.s32.totalorder %v403_v6, %v3622_v60  ;;  %v1926_v4 = vld [vmem:[#allocation7 + $0x20] sm:$0xff]  ;;  %v1925_v6 = vld [vmem:[#allocation7 + $0x18] sm:$0xff]  ;;  %v1924_v7 = vld [vmem:[#allocation7 + $0x10] sm:$0xff] }
  0xf8   : > { %v3764_v9 = vsel %vm446_vm10, 1.0, %v3447_v1  ;;  %1208 = vmatpush1.msra.mxu1 %v1161_v5  ;;  %v3776_v14 = vsel %vm447_vm11, 1.0, %v3447_v1  ;;  %v4005_v5 = vld [vmem:[%s3824_s25 + $0xc8] sm:$0xff] }
  0xf9   : > { %2501 = vmatmul.mubr.msk.f32.gmra.mxu0 %vm542_vm0, %v3678_v35  ;;  %2761 = vmatmul.mubr.msk.f32.gmra.mxu1 %vm542_vm0, %v3761_v8  ;;  %v3876_v35 = vld [vmem:[%s3824_s25 + $0x28] sm:$0xff] }
  0xfa   : > { %v409_v12 = vpop.permute.xlu1 %408  ;;  %2763 = vmatprep.mubr.msk.f32.mxu1 %vm542_vm0, %v3764_v9  ;;  %v406_v13 = vpop.permute.xlu0 %405  ;;  %781 = vmatprep.mubr.f32.mxu0 %v3447_v1 }
  0xfb   : > { %vm448_vm12 = vcmp.eq.s32.totalorder %v406_v13, %v3622_v60  ;;  %1209 = vmatprep.subr.mxu1 %v1160_v10  ;;  %vm449_vm13 = vcmp.eq.s32.totalorder %v409_v12, %v3622_v60  ;;  %v1922_v10 = vld [vmem:[#allocation7] sm:$0xff]  ;;  %v4025_v13 = vld [vmem:[%s3824_s25 + $0xe8] sm:$0xff] }
  0xfc   : > { %v3779_v15 = vsel %vm448_vm12, 1.0, %v3447_v1  ;;  %1210 = vmatpush1.msra.mxu1 %v1159_v11  ;;  %v3791_v20 = vsel %vm449_vm13, 1.0, %v3447_v1  ;;  %v4015_v11 = vld [vmem:[%s3824_s25 + $0xd8] sm:$0xff]  ;;  %v4020_v12 = vld [vmem:[%s3824_s25 + $0xe0] sm:$0xff] }
  0xfd   : > { %2502 = vmatmul.mubr.msk.f32.gmra.mxu0 %vm542_vm0, %v3689_v40  ;;  %2764 = vmatmul.mubr.msk.f32.gmra.mxu1 %vm542_vm0, %v3776_v14  ;;  %v1937_v40 = vld [vmem:[#allocation7 + $0x78] sm:$0xff] }
  0xfe   : > { %v415_v18 = vpop.permute.xlu1 %414  ;;  %2766 = vmatprep.mubr.msk.f32.mxu1 %vm542_vm0, %v3779_v15  ;;  %v412_v19 = vpop.permute.xlu0 %411  ;;  %787 = vmatprep.mubr.f32.mxu0 %v3447_v1 }
  0xff   : > { %vm450_vm14 = vcmp.eq.s32.totalorder %v412_v19, %v3622_v60  ;;  %1211 = vmatprep.subr.mxu1 %v1158_v16  ;;  %vm451_vm15 = vcmp.eq.s32.totalorder %v415_v18, %v3622_v60  ;;  %2775 = vmatprep.subr.mxu0 %v1937_v40 }
 0x100   : > { %v3794_v21 = vsel %vm450_vm14, 1.0, %v3447_v1  ;;  %1212 = vmatpush1.msra.mxu1 %v1157_v17  ;;  %v3806_v26 = vsel %vm451_vm15, 1.0, %v3447_v1  ;;  %2776 = vmatpush3.msra.mxu0 %v1937_v40 }
 0x101   : > { %2503 = vmatmul.mubr.msk.f32.gmra.mxu0 %vm542_vm0, %v3692_v41  ;;  %2767 = vmatmul.mubr.msk.f32.gmra.mxu1 %vm542_vm0, %v3791_v20  ;;  %v3916_v41 = vld [vmem:[%s3824_s25 + $0x50] sm:$0xff] }
 0x102   : > { %v421_v24 = vpop.permute.xlu1 %420  ;;  %2769 = vmatprep.mubr.msk.f32.mxu1 %vm542_vm0, %v3794_v21  ;;  %v418_v25 = vpop.permute.xlu0 %417  ;;  %793 = vmatprep.mubr.f32.mxu0 %v3447_v1 }
 0x103   : > { %vm452_vm1 = vcmp.eq.s32.totalorder %v418_v25, %v3622_v60  ;;  %1213 = vmatprep.subr.mxu1 %v1156_v22  ;;  %vm453_vm2 = vcmp.eq.s32.totalorder %v421_v24, %v3622_v60  ;;  %2777 = vmatprep.subr.mxu0 %v1936_v43 }
 0x104   : > { %v3809_v27 = vsel %vm452_vm1, 1.0, %v3447_v1  ;;  %1214 = vmatpush1.msra.mxu1 %v1155_v23  ;;  %v3827_v60 = vsel %vm453_vm2, 1.0, %v3447_v1  ;;  %2778 = vmatpush3.msra.mxu0 %v1936_v43 }
 0x105   : > { %2504 = vmatmul.mubr.msk.f32.gmra.mxu0 %vm542_vm0, %v3703_v46  ;;  %2770 = vmatmul.mubr.msk.f32.gmra.mxu1 %vm542_vm0, %v3806_v26  ;;  %v1935_v46 = vld [vmem:[#allocation7 + $0x68] sm:$0xff] }
 0x106   : > { %2772 = vmatprep.mubr.msk.f32.mxu1 %vm542_vm0, %v3809_v27  ;;  %799 = vmatprep.mubr.f32.mxu0 %v3447_v1 }
 0x107   : > { %1215 = vmatprep.subr.mxu1 %v1154_v28  ;;  %2779 = vmatprep.subr.mxu0 %v1935_v46 }
 0x108   : > { %1216 = vmatpush1.msra.mxu1 %v1153_v29  ;;  %2780 = vmatpush3.msra.mxu0 %v1935_v46 }
 0x109   : > { %2505 = vmatmul.mubr.msk.f32.gmra.mxu0 %vm542_vm0, %v3706_v47  ;;  %2773 = vmatmul.mubr.msk.f32.gmra.mxu1 %vm542_vm0, %v3827_v60  ;;  %v3948_v47 = vld [vmem:[%s3824_s25 + $0x70] sm:$0xff] }
 0x10a   : > { %805 = vmatprep.mubr.f32.mxu0 %v3447_v1  ;;  %1249 = vmatprep.mubr.f32.mxu1 %v3447_v1 }
 0x10b   : > { %2781 = vmatprep.subr.mxu0 %v1934_v49 }
 0x10c   : > { %2782 = vmatpush3.msra.mxu0 %v1934_v49 }
 0x10d   : > { %2506 = vmatmul.mubr.msk.f32.gmra.mxu0 %vm542_vm0, %v3717_v52  ;;  %1250 = vmatmul.mubr.f32.vlgmr.msra.gmra.mxu1 %v3836_v30  ;;  %v3970_v52 = vld [vmem:[%s3824_s25 + $0x90] sm:$0xff] }
 0x10e   : > { %811 = vmatprep.mubr.f32.mxu0 %v3447_v1  ;;  %1255 = vmatprep.mubr.f32.mxu1 %v3447_v1 }
 0x10f   : > { %2783 = vmatprep.subr.mxu0 %v1933_v55 }
 0x110   : > { %2784 = vmatpush3.msra.mxu0 %v1933_v55 }
 0x111   : > { %2507 = vmatmul.mubr.msk.f32.gmra.mxu0 %vm542_vm0, %v3720_v53  ;;  %1256 = vmatmul.mubr.f32.gmra.mxu1 %v3844_v31  ;;  %v3975_v53 = vld [vmem:[%s3824_s25 + $0x98] sm:$0xff] }
 0x112   : > { %817 = vmatprep.mubr.f32.mxu0 %v3447_v1  ;;  %1261 = vmatprep.mubr.f32.mxu1 %v3447_v1 }
 0x113   : > { %2785 = vmatprep.subr.mxu0 %v1932_v57 }
 0x114   : > { %2786 = vmatpush3.msra.mxu0 %v1932_v57 }
 0x115   : > { %2508 = vmatmul.mubr.msk.f32.gmra.mxu0 %vm542_vm0, %v3731_v58  ;;  %1262 = vmatmul.mubr.f32.gmra.mxu1 %v3852_v32  ;;  %v3990_v58 = vld [vmem:[%s3824_s25 + $0xb0] sm:$0xff] }
 0x116   : > { %823 = vmatprep.mubr.f32.mxu0 %v3447_v1  ;;  %1267 = vmatprep.mubr.f32.mxu1 %v3447_v1 }
 0x119   : > { %2509 = vmatmul.mubr.msk.f32.gmra.mxu0 %vm542_vm0, %v3734_v59  ;;  %1268 = vmatmul.mubr.f32.gmra.mxu1 %v3860_v33  ;;  %v1931_v59 = vld [vmem:[#allocation7 + $0x48] sm:$0xff] }
 0x11a   : > { %829 = vmatprep.mubr.f32.mxu0 %v3447_v1  ;;  %1273 = vmatprep.mubr.f32.mxu1 %v3447_v1 }
 0x11b   : > { %2787 = vmatprep.subr.mxu0 %v1931_v59 }
 0x11c   : > { %2788 = vmatpush3.msra.mxu0 %v1931_v59 }
 0x11d   : > { %2510 = vmatmul.mubr.msk.f32.gmra.mxu0 %vm542_vm0, %v3746_v2  ;;  %1274 = vmatmul.mubr.f32.gmra.mxu1 %v3868_v34  ;;  %v4000_v2 = vld [vmem:[%s3824_s25 + $0xc0] sm:$0xff] }
 0x11e   : > { %835 = vmatprep.mubr.f32.mxu0 %v3447_v1  ;;  %1279 = vmatprep.mubr.f32.mxu1 %v3447_v1 }
 0x11f   : > { %2789 = vmatprep.subr.mxu0 %v1930_v61 }
 0x120   : > { %2790 = vmatpush3.msra.mxu0 %v1930_v61 }
 0x121   : > { %2511 = vmatmul.mubr.msk.f32.gmra.mxu0 %vm542_vm0, %v3749_v3  ;;  %1280 = vmatmul.mubr.f32.gmra.mxu1 %v3876_v35  ;;  %v1927_v3 = vld [vmem:[#allocation7 + $0x28] sm:$0xff] }
 0x122   : > { %841 = vmatprep.mubr.f32.mxu0 %v3447_v1  ;;  %1285 = vmatprep.mubr.f32.mxu1 %v3447_v1 }
 0x123   : > { %2791 = vmatprep.subr.mxu0 %v1929_v63 }
 0x124   : > { %2792 = vmatpush3.msra.mxu0 %v1929_v63 }
 0x125   : > { %2512 = vmatmul.mubr.msk.f32.gmra.mxu0 %vm542_vm0, %v3761_v8  ;;  %1286 = vmatmul.mubr.f32.gmra.mxu1 %v3884_v36  ;;  %v4010_v8 = vld [vmem:[%s3824_s25 + $0xd0] sm:$0xff] }
 0x126   : > { %847 = vmatprep.mubr.f32.mxu0 %v3447_v1  ;;  %1291 = vmatprep.mubr.f32.mxu1 %v3447_v1 }
 0x127   : > { %2793 = vmatprep.subr.mxu0 %v1928_v0 }
 0x128   : > { %2794 = vmatpush3.msra.mxu0 %v1928_v0 }
 0x129   : > { %2513 = vmatmul.mubr.msk.f32.gmra.mxu0 %vm542_vm0, %v3764_v9  ;;  %1292 = vmatmul.mubr.f32.gmra.mxu1 %v3892_v37  ;;  %v1923_v9 = vld [vmem:[#allocation7 + $0x8] sm:$0xff] }
 0x12a   : > { %853 = vmatprep.mubr.f32.mxu0 %v3447_v1  ;;  %1297 = vmatprep.mubr.f32.mxu1 %v3447_v1 }
 0x12b   : > { %2795 = vmatprep.subr.mxu0 %v1927_v3 }
 0x12c   : > { %2796 = vmatpush3.msra.mxu0 %v1927_v3 }
 0x12d   : > { %2514 = vmatmul.mubr.msk.f32.gmra.mxu0 %vm542_vm0, %v3776_v14  ;;  %1298 = vmatmul.mubr.f32.gmra.mxu1 %v3900_v38  ;;  %v4030_v14 = vld [vmem:[%s3824_s25 + $0xf0] sm:$0xff] }
 0x12e   : > { %859 = vmatprep.mubr.f32.mxu0 %v3447_v1  ;;  %1303 = vmatprep.mubr.f32.mxu1 %v3447_v1 }
 0x12f   : > { %2797 = vmatprep.subr.mxu0 %v1926_v4 }
 0x130   : > { %2798 = vmatpush3.msra.mxu0 %v1926_v4 }
 0x131   : > { %2515 = vmatmul.mubr.msk.f32.gmra.mxu0 %vm542_vm0, %v3779_v15  ;;  %1304 = vmatmul.mubr.f32.gmra.mxu1 %v3908_v39  ;;  %v4035_v15 = vld [vmem:[%s3824_s25 + $0xf8] sm:$0xff] }
 0x132   : > { %865 = vmatprep.mubr.f32.mxu0 %v3447_v1  ;;  %1309 = vmatprep.mubr.f32.mxu1 %v3447_v1 }
 0x133   : > { %2799 = vmatprep.subr.mxu0 %v1925_v6 }
 0x134   : > { %2800 = vmatpush3.msra.mxu0 %v1925_v6 }
 0x135   : > { %2516 = vmatmul.mubr.msk.f32.gmra.mxu0 %vm542_vm0, %v3791_v20  ;;  %1310 = vmatmul.mubr.f32.gmra.mxu1 %v3916_v41 }
 0x136   : > { %871 = vmatprep.mubr.f32.mxu0 %v3447_v1  ;;  %1315 = vmatprep.mubr.f32.mxu1 %v3447_v1 }
 0x137   : > { %2801 = vmatprep.subr.mxu0 %v1924_v7 }
 0x138   : > { %2802 = vmatpush3.msra.mxu0 %v1924_v7 }
 0x139   : > { %2517 = vmatmul.mubr.msk.f32.gmra.mxu0 %vm542_vm0, %v3794_v21  ;;  %1316 = vmatmul.mubr.f32.gmra.mxu1 %v3924_v42 }
 0x13a   : > { %877 = vmatprep.mubr.f32.mxu0 %v3447_v1  ;;  %1321 = vmatprep.mubr.f32.mxu1 %v3447_v1 }
 0x13b   : > { %2803 = vmatprep.subr.mxu0 %v1923_v9 }
 0x13c   : > { %2804 = vmatpush3.msra.mxu0 %v1923_v9 }
 0x13d   : > { %2518 = vmatmul.mubr.msk.f32.gmra.mxu0 %vm542_vm0, %v3806_v26  ;;  %1322 = vmatmul.mubr.f32.gmra.mxu1 %v3932_v44 }
 0x13e   : > { %883 = vmatprep.mubr.f32.mxu0 %v3447_v1  ;;  %1327 = vmatprep.mubr.f32.mxu1 %v3447_v1 }
 0x13f   : > { %2805 = vmatprep.subr.mxu0 %v1922_v10 }
 0x140   : > { %2806 = vmatpush3.msra.mxu0 %v1922_v10 }
 0x141   : > { %2519 = vmatmul.mubr.msk.f32.gmra.mxu0 %vm542_vm0, %v3809_v27  ;;  %1328 = vmatmul.mubr.f32.gmra.mxu1 %v3940_v45 }
 0x142   : > { %889 = vmatprep.mubr.f32.mxu0 %v3447_v1  ;;  %1333 = vmatprep.mubr.f32.mxu1 %v3447_v1 }
 0x145   : > { %2520 = vmatmul.mubr.msk.f32.gmra.mxu0 %vm542_vm0, %v3827_v60  ;;  %1334 = vmatmul.mubr.f32.gmra.mxu1 %v3948_v47 }
 0x146   : > { %1339 = vmatprep.mubr.f32.mxu1 %v3447_v1 }
 0x149   : > { %1340 = vmatmul.mubr.f32.gmra.mxu1 %v3955_v48 }
 0x14a   : > { %1345 = vmatprep.mubr.f32.mxu1 %v3447_v1 }
 0x14d   : > { %1346 = vmatmul.mubr.f32.gmra.mxu1 %v3960_v50 }
 0x14e   : > { %1351 = vmatprep.mubr.f32.mxu1 %v3447_v1 }
 0x151   : > { %1352 = vmatmul.mubr.f32.gmra.mxu1 %v3965_v51 }
 0x152   : > { %1357 = vmatprep.mubr.f32.mxu1 %v3447_v1 }
 0x155   : > { %1358 = vmatmul.mubr.f32.gmra.mxu1 %v3970_v52 }
 0x156   : > { %1363 = vmatprep.mubr.f32.mxu1 %v3447_v1 }
 0x159   : > { %1364 = vmatmul.mubr.f32.gmra.mxu1 %v3975_v53 }
 0x15a   : > { %1369 = vmatprep.mubr.f32.mxu1 %v3447_v1 }
 0x15d   : > { %1370 = vmatmul.mubr.f32.gmra.mxu1 %v3980_v54 }
 0x15e   : > { %1375 = vmatprep.mubr.f32.mxu1 %v3447_v1 }
 0x161   : > { %1376 = vmatmul.mubr.f32.gmra.mxu1 %v3985_v56 }
 0x162   : > { %1381 = vmatprep.mubr.f32.mxu1 %v3447_v1 }
 0x165   : > { %1382 = vmatmul.mubr.f32.gmra.mxu1 %v3990_v58 }
 0x166   : > { %1387 = vmatprep.mubr.f32.mxu1 %v3447_v1 }
 0x169   : > { %1388 = vmatmul.mubr.f32.gmra.mxu1 %v3995_v62 }
 0x16a   : > { %1393 = vmatprep.mubr.f32.mxu1 %v3447_v1 }
 0x16d   : > { %1394 = vmatmul.mubr.f32.gmra.mxu1 %v4000_v2 }
 0x16e   : > { %1399 = vmatprep.mubr.f32.mxu1 %v3447_v1 }
 0x171   : > { %1400 = vmatmul.mubr.f32.gmra.mxu1 %v4005_v5 }
 0x172   : > { %1405 = vmatprep.mubr.f32.mxu1 %v3447_v1 }
 0x175   : > { %1406 = vmatmul.mubr.f32.gmra.mxu1 %v4010_v8 }
 0x176   : > { %1411 = vmatprep.mubr.f32.mxu1 %v3447_v1 }
 0x179   : > { %1412 = vmatmul.mubr.f32.gmra.mxu1 %v4015_v11 }
 0x17a   : > { %1417 = vmatprep.mubr.f32.mxu1 %v3447_v1 }
 0x17d   : > { %1418 = vmatmul.mubr.f32.gmra.mxu1 %v4020_v12 }
 0x17e   : > { %1423 = vmatprep.mubr.f32.mxu1 %v3447_v1 }
 0x181   : > { %1424 = vmatmul.mubr.f32.gmra.mxu1 %v4025_v13 }
 0x182   : > { %1429 = vmatprep.mubr.f32.mxu1 %v3447_v1 }
 0x185   : > { %1430 = vmatmul.mubr.f32.gmra.mxu1 %v4030_v14 }
 0x186   : > { %1435 = vmatprep.mubr.f32.mxu1 %v3447_v1 }
 0x189   : > { %v4037_v16 = vpop.f32.mrf.mxu0  ;;  %1436 = vmatmul.mubr.f32.gmra.mxu1 %v4035_v15 }
 0x18a   : > { %4571 = vst [vmem:[#allocation12_spill] sm:$0xff] %v4037_v16 }
 0x18b   : > { %v4040_v17 = vpop.f32.mrf.mxu0 }
 0x18d   : > { %v4042_v18 = vpop.f32.mrf.mxu0  ;;  %v4044_v19 = vpop.f32.mrf.mxu1 }
 0x18e   : > { %4572 = vst [vmem:[#allocation13_spill] sm:$0xff] %v4042_v18 }
 0x18f   : > { %v4046_v20 = vpop.f32.mrf.mxu0  ;;  %v4048_v21 = vpop.f32.mrf.mxu1 }
 0x191   : > { %v4050_v22 = vpop.f32.mrf.mxu0  ;;  %v4052_v23 = vpop.f32.mrf.mxu1 }
 0x192   : > { %4573 = vst [vmem:[#allocation14_spill] sm:$0xff] %v4050_v22  ;;  %4574 = vst [vmem:[#allocation15_spill] sm:$0xff] %v4052_v23 }
 0x193   : > { %v4054_v1 = vpop.f32.mrf.mxu0  ;;  %v4056_v24 = vpop.f32.mrf.mxu1 }
 0x194   : > { %4575 = vst [vmem:[#allocation16_spill] sm:$0xff] %v4056_v24 }
 0x195   : > { %v4058_v25 = vpop.f32.mrf.mxu0  ;;  %v4060_v26 = vpop.f32.mrf.mxu1 }
 0x196   : > { %4576 = vst [vmem:[#allocation17_spill] sm:$0xff] %v4058_v25  ;;  %4577 = vst [vmem:[#allocation18_spill] sm:$0xff] %v4060_v26 }
 0x197   : > { %v4062_v27 = vpop.f32.mrf.mxu0  ;;  %v4064_v28 = vpop.f32.mrf.mxu1 }
 0x198   : > { %4578 = vst [vmem:[#allocation19_spill] sm:$0xff] %v4064_v28 }
 0x199   : > { %v4066_v29 = vpop.f32.mrf.mxu0  ;;  %v4068_v60 = vpop.f32.mrf.mxu1 }
 0x19a   : > { %4579 = vst [vmem:[#allocation20_spill] sm:$0xff] %v4066_v29  ;;  %4580 = vst [vmem:[#allocation21_spill] sm:$0xff] %v4068_v60 }
 0x19b   : > { %v4070_v40 = vpop.f32.mrf.mxu0  ;;  %v4072_v43 = vpop.f32.mrf.mxu1 }
 0x19c   : > { %4581 = vst [vmem:[#allocation22_spill] sm:$0xff] %v4072_v43 }
 0x19d   : > { %v4074_v46 = vpop.f32.mrf.mxu0  ;;  %v4076_v49 = vpop.f32.mrf.mxu1 }
 0x19e   : > { %4582 = vst [vmem:[#allocation23_spill] sm:$0xff] %v4074_v46  ;;  %4583 = vst [vmem:[#allocation24_spill] sm:$0xff] %v4076_v49 }
 0x19f   : > { %v4078_v55 = vpop.f32.mrf.mxu0  ;;  %v4080_v57 = vpop.f32.mrf.mxu1 }
 0x1a0   : > { %4584 = vst [vmem:[#allocation25_spill] sm:$0xff] %v4080_v57 }
 0x1a1   : > { %v4082_v59 = vpop.f32.mrf.mxu0  ;;  %v4084_v61 = vpop.f32.mrf.mxu1 }
 0x1a2   : > { %4585 = vst [vmem:[#allocation26_spill] sm:$0xff] %v4082_v59  ;;  %4586 = vst [vmem:[#allocation27_spill] sm:$0xff] %v4084_v61 }
 0x1a3   : > { %v4086_v63 = vpop.f32.mrf.mxu0  ;;  %v4088_v0 = vpop.f32.mrf.mxu1 }
 0x1a4   : > { %4587 = vst [vmem:[#allocation28_spill] sm:$0xff] %v4088_v0 }
 0x1a5   : > { %v4090_v3 = vpop.f32.mrf.mxu0  ;;  %v4092_v4 = vpop.f32.mrf.mxu1 }
 0x1a6   : > { %4588 = vst [vmem:[#allocation29_spill] sm:$0xff] %v4090_v3  ;;  %4589 = vst [vmem:[#allocation30_spill] sm:$0xff] %v4092_v4 }
 0x1a7   : > { %v4094_v6 = vpop.f32.mrf.mxu0  ;;  %v4096_v7 = vpop.f32.mrf.mxu1 }
 0x1a8   : > { %4590 = vst [vmem:[#allocation31_spill] sm:$0xff] %v4096_v7 }
 0x1a9   : > { %v4098_v9 = vpop.f32.mrf.mxu0  ;;  %v4100_v10 = vpop.f32.mrf.mxu1 }
 0x1aa   : > { %4591 = vst [vmem:[#allocation32_spill] sm:$0xff] %v4098_v9  ;;  %4592 = vst [vmem:[#allocation33_spill] sm:$0xff] %v4100_v10 }
 0x1ab   : > { %v4102_v29 = vpop.f32.mrf.mxu0  ;;  %v4104_v59 = vpop.f32.mrf.mxu1 }
 0x1ac   : > { %4593 = vst [vmem:[#allocation34_spill] sm:$0xff] %v4104_v59 }
 0x1ad   : > { %v4106_v46 = vpop.f32.mrf.mxu0  ;;  %v4108_v61 = vpop.f32.mrf.mxu1 }
 0x1ae   : > { %4594 = vst [vmem:[#allocation35_spill] sm:$0xff] %v4106_v46  ;;  %4595 = vst [vmem:[#allocation36_spill] sm:$0xff] %v4108_v61 }
 0x1af   : > { %v4110_v0 = vpop.f32.mrf.mxu0  ;;  %v4112_v3 = vpop.f32.mrf.mxu1 }
 0x1b0   : > { %4596 = vst [vmem:[#allocation37_spill] sm:$0xff] %v4112_v3 }
 0x1b1   : > { %v4114_v4 = vpop.f32.mrf.mxu0  ;;  %v4116_v22 = vpop.f32.mrf.mxu1 }
 0x1b2   : > { %4597 = vst [vmem:[#allocation38_spill] sm:$0xff] %v4114_v4  ;;  %4598 = vst [vmem:[#allocation39_spill] sm:$0xff] %v4116_v22 }
 0x1b3   : > { %v4118_v7 = vpop.f32.mrf.mxu0  ;;  %v4120_v9 = vpop.f32.mrf.mxu1 }
 0x1b4   : > { %4599 = vst [vmem:[#allocation40_spill] sm:$0xff] %v4120_v9 }
 0x1b5   : > { %v4122_v10 = vpop.f32.mrf.mxu0  ;;  %v4124_v57 = vpop.f32.mrf.mxu1 }
 0x1b6   : > { %4600 = vst [vmem:[#allocation41_spill] sm:$0xff] %v4122_v10  ;;  %4601 = vst [vmem:[#allocation42_spill] sm:$0xff] %v4124_v57 }
 0x1b7   : > { %v4126_v59 = vpop.f32.mrf.mxu0  ;;  %v4128_v46 = vpop.f32.mrf.mxu1 }
 0x1b8   : > { %4602 = vst [vmem:[#allocation43_spill] sm:$0xff] %v4128_v46 }
 0x1b9   : > { %v4130_v61 = vpop.f32.mrf.mxu0  ;;  %v4132_v25 = vpop.f32.mrf.mxu1 }
 0x1ba   : > { %4603 = vst [vmem:[#allocation44_spill] sm:$0xff] %v4130_v61  ;;  %4604 = vst [vmem:[#allocation45_spill] sm:$0xff] %v4132_v25 }
 0x1bb   : > { %v4134_v3 = vpop.f32.mrf.mxu0  ;;  %v4136_v4 = vpop.f32.mrf.mxu1 }
 0x1bc   : > { %4605 = vst [vmem:[#allocation46_spill] sm:$0xff] %v4136_v4 }
 0x1bd   : > { %v4138_v22 = vpop.f32.mrf.mxu0  ;;  %v4140_v49 = vpop.f32.mrf.mxu1 }
 0x1be   : > { %4606 = vst [vmem:[#allocation47_spill] sm:$0xff] %v4138_v22  ;;  %4607 = vst [vmem:[#allocation48_spill] sm:$0xff] %v4140_v49 }
 0x1bf   : > { %v4142_v9 = vpop.f32.mrf.mxu0  ;;  %v4144_v10 = vpop.f32.mrf.mxu1 }
 0x1c0   : > { %4608 = vst [vmem:[#allocation49_spill] sm:$0xff] %v4144_v10 }
 0x1c1   : > { %v4146_v57 = vpop.f32.mrf.mxu0  ;;  %v4148_v16 = vpop.f32.mrf.mxu1 }
 0x1c2   : > { %4609 = vst [vmem:[#allocation50_spill] sm:$0xff] %v4146_v57  ;;  %4610 = vst [vmem:[#allocation51_spill] sm:$0xff] %v4148_v16 }
 0x1c3   : > { %v4150_v46 = vpop.f32.mrf.mxu0  ;;  %v4152_v61 = vpop.f32.mrf.mxu1 }
 0x1c4   : > { %4611 = vst [vmem:[#allocation52_spill] sm:$0xff] %v4152_v61 }
 0x1c5   : > { %v4154_v25 = vpop.f32.mrf.mxu0  ;;  %v4156_v43 = vpop.f32.mrf.mxu1 }
 0x1c6   : > { %4612 = vst [vmem:[#allocation53_spill] sm:$0xff] %v4154_v25  ;;  %4613 = vst [vmem:[#allocation54_spill] sm:$0xff] %v4156_v43 }
 0x1c7   : > { %v4158_v4 = vpop.f32.mrf.mxu1  ;;  %v4160_v22 = vpop.f32.mrf.mxu0 }
 0x1c8   : > { %4614 = vst [vmem:[#allocation55_spill] sm:$0xff] %v4158_v4 }
 0x1c9   : > { %v4162_v49 = vpop.f32.mrf.mxu1  ;;  %v4166_v10 = vpop.f32.mrf.mxu0 }
 0x1ca   : > { %4615 = vst [vmem:[#allocation56_spill] sm:$0xff] %v4162_v49  ;;  %4617 = vst [vmem:[#allocation58_spill] sm:$0xff] %v4166_v10 }
 0x1cb   : > { %v4164_v18 = vpop.f32.mrf.mxu1  ;;  %v4172_v25 = vpop.f32.mrf.mxu0 }
 0x1cc   : > { %4616 = vst [vmem:[#allocation57_spill] sm:$0xff] %v4164_v18 }
 0x1cd   : > { %v1251_v57 = vpop.f32.mrf.mxu1  ;;  %v4177_v18 = vpop.f32.mrf.mxu0 }
 0x1ce   : > { %v1442_v16 = vadd.f32 %v1251_v57, %v4040_v17  ;;  %4618 = vst [vmem:[#allocation59_spill] sm:$0xff] %v4177_v18 }
 0x1cf   : > { %v1253_v60 = vpop.f32.mrf.mxu1 }
 0x1d0   : > { %v2553_v28 = vmul.f32 -1.442695, %v1442_v16  ;;  %v4170_v61 = vadd.f32 %v1253_v60, %v4048_v21  ;;  %v4182_v21 = vpop.f32.mrf.mxu0 }
 0x1d1   : > { %v1257_v43 = vpop.f32.mrf.mxu1 }
 0x1d2   : > { %2937 = vpow2.f32 %v2553_v28  ;;  %v1443_v4 = vadd.f32 %v1257_v43, %v4046_v20  ;;  %v4187_v43 = vpop.f32.mrf.mxu0 }
 0x1d3   : > { %v4175_v26 = vpop.f32.mrf.mxu1  ;;  %4621 = vst [vmem:[#allocation62_spill] sm:$0xff] %v4187_v43 }
 0x1d4   : > { %v2554_v49 = vmul.f32 -1.442695, %v1443_v4 }
 0x1d5   : > { %v1263_v10 = vpop.f32.mrf.mxu1 }
 0x1d6   : > { %2939 = vpow2.f32 %v2554_v49  ;;  %v1444_v17 = vadd.f32 %v1263_v10, %v4054_v1 }
 0x1d7   : > { %v4180_v57 = vpop.f32.mrf.mxu1 }
 0x1d8   : > { %4619 = vst [vmem:[#allocation60_spill] sm:$0xff] %v4180_v57  ;;  %v2555_v16 = vmul.f32 -1.442695, %v1444_v17  ;;  %v4192_v57 = vpop.f32.mrf.mxu0 }
 0x1d9   : > { %v1269_v60 = vpop.f32.mrf.mxu1 }
 0x1da   : > { %2941 = vpow2.f32 %v2555_v16  ;;  %v1445_v28 = vadd.f32 %v1269_v60, %v4062_v27 }
 0x1db   : > { %v4185_v24 = vpop.f32.mrf.mxu1 }
 0x1dc   : > { %4620 = vst [vmem:[#allocation61_spill] sm:$0xff] %v4185_v24  ;;  %v2556_v20 = vmul.f32 -1.442695, %v1445_v28 }
 0x1dd   : > { %v1275_v4 = vpop.f32.mrf.mxu1 }
 0x1de   : > { %2943 = vpow2.f32 %v2556_v20  ;;  %v1446_v49 = vadd.f32 %v1275_v4, %v4070_v40  ;;  %v4197_v20 = vpop.f32.mrf.mxu0 }
 0x1df   : > { %v2938_v18 = vpop.eup %2937  ;;  %v4190_v1 = vpop.f32.mrf.mxu1  ;;  %4623 = vst [vmem:[#allocation64_spill] sm:$0xff] %v4197_v20 }
 0x1e0   : > { %4622 = vst [vmem:[#allocation63_spill] sm:$0xff] %v4190_v1  ;;  %v1570_v10 = vadd.f32 1.0, %v2938_v18  ;;  %v2557_v17 = vmul.f32 -1.442695, %v1446_v49  ;;  %v4202_v24 = vpop.f32.mrf.mxu0 }
 0x1e1   : > { %v1281_v23 = vpop.f32.mrf.mxu1 }
 0x1e2   : > { %2945 = vrcp.f32 %v1570_v10  ;;  %v1447_v27 = vadd.f32 %v1281_v23, %v4078_v55  ;;  %v4207_v20 = vpop.f32.mrf.mxu0 }
 0x1e3   : > { %v2940_v16 = vpop.eup %2939  ;;  %2947 = vpow2.f32 %v2557_v17  ;;  %v4195_v60 = vpop.f32.mrf.mxu1  ;;  %4625 = vst [vmem:[#allocation66_spill] sm:$0xff] %v4207_v20 }
 0x1e4   : > { %v1571_v28 = vadd.f32 1.0, %v2940_v16  ;;  %v2558_v43 = vmul.f32 -1.442695, %v1447_v27 }
 0x1e5   : > { %v1287_v40 = vpop.f32.mrf.mxu1 }
 0x1e6   : > { %2949 = vrcp.f32 %v1571_v28  ;;  %v1448_v4 = vadd.f32 %v1287_v40, %v4086_v63 }
 0x1e7   : > { %v2942_v18 = vpop.eup %2941  ;;  %2951 = vpow2.f32 %v2558_v43  ;;  %v4200_v49 = vpop.f32.mrf.mxu1 }
 0x1e8   : > { %4624 = vst [vmem:[#allocation65_spill] sm:$0xff] %v4200_v49  ;;  %v1572_v1 = vadd.f32 1.0, %v2942_v18  ;;  %v2559_v10 = vmul.f32 -1.442695, %v1448_v4 }
 0x1e9   : > { %v1293_v23 = vpop.f32.mrf.mxu1 }
 0x1ea   : > { %2953 = vrcp.f32 %v1572_v1  ;;  %v1449_v55 = vadd.f32 %v1293_v23, %v4094_v6  ;;  %v4213_v23 = vpop.f32.mrf.mxu0 }
 0x1eb   : > { %v2944_v17 = vpop.eup %2943  ;;  %2955 = vpow2.f32 %v2559_v10  ;;  %v4205_v27 = vpop.f32.mrf.mxu1 }
 0x1ec   : > { %v1573_v16 = vadd.f32 1.0, %v2944_v17  ;;  %v2560_v28 = vmul.f32 -1.442695, %v1449_v55  ;;  %v4219_v20 = vpop.f32.mrf.mxu0 }
 0x1ed   : > { %v1299_v63 = vpop.f32.mrf.mxu1 }
 0x1ee   : > { %2957 = vrcp.f32 %v1573_v16  ;;  %v1450_v43 = vadd.f32 %v1299_v63, %v4102_v29 }
 0x1ef   : > { %v2946_v40 = vpop.eup %2945  ;;  %2959 = vpow2.f32 %v2560_v28  ;;  %v4210_v4 = vpop.f32.mrf.mxu1 }
 0x1f0   : > { %v2948_v18 = vpop.eup %2947  ;;  %v2561_v1 = vmul.f32 -1.442695, %v1450_v43  ;;  %v1890_v6 = vmul.f32 %v2946_v40, %v3836_v30 }
 0x1f1   : > { %v1574_v10 = vadd.f32 1.0, %v2948_v18  ;;  %v1305_v49 = vpop.f32.mrf.mxu1 }
 0x1f2   : > { %2961 = vpow2.f32 %v2561_v1  ;;  %v1451_v55 = vadd.f32 %v1305_v49, %v4110_v0  ;;  %2807 = vmatprep.mubr.f32.mxu0 %v1890_v6 }
 0x1f3   : > { %v2950_v17 = vpop.eup %2949  ;;  %2963 = vrcp.f32 %v1574_v10  ;;  %v4216_v16 = vpop.f32.mrf.mxu1 }
 0x1f4   : > { %v2952_v29 = vpop.eup %2951  ;;  %v2562_v28 = vmul.f32 -1.442695, %v1451_v55  ;;  %v1891_v63 = vmul.f32 %v2950_v17, %v3844_v31  ;;  %v4225_v10 = vpop.f32.mrf.mxu0 }
 0x1f5   : > { %v1575_v43 = vadd.f32 1.0, %v2952_v29  ;;  %v1311_v30 = vpop.f32.mrf.mxu1 }
 0x1f6   : > { %2965 = vpow2.f32 %v2562_v28  ;;  %v1452_v40 = vadd.f32 %v1311_v30, %v4118_v7  ;;  %2808 = vmatmul.mubr.f32.vlgmr.msra.gmra.mxu0 %v1891_v63  ;;  %v4231_v30 = vpop.f32.mrf.mxu0 }
 0x1f7   : > { %v2954_v18 = vpop.eup %2953  ;;  %2967 = vrcp.f32 %v1575_v43  ;;  %v4222_v0 = vpop.f32.mrf.mxu1  ;;  %4626 = vst [vmem:[#allocation67_spill] sm:$0xff] %v4231_v30 }
 0x1f8   : > { %v2956_v49 = vpop.eup %2955  ;;  %v2563_v1 = vmul.f32 -1.442695, %v1452_v40  ;;  %v1892_v6 = vmul.f32 %v2954_v18, %v3852_v32 }
 0x1f9   : > { %v1576_v55 = vadd.f32 1.0, %v2956_v49  ;;  %v1317_v31 = vpop.f32.mrf.mxu1 }
 0x1fa   : > { %2969 = vpow2.f32 %v2563_v1  ;;  %v1453_v17 = vadd.f32 %v1317_v31, %v4126_v59  ;;  %2810 = vmatprep.mubr.f32.mxu0 %v1892_v6  ;;  %v4236_v31 = vpop.f32.mrf.mxu0 }
 0x1fb   : > { %v2958_v29 = vpop.eup %2957  ;;  %2971 = vrcp.f32 %v1576_v55  ;;  %v4228_v7 = vpop.f32.mrf.mxu1 }
 0x1fc   : > { %v2960_v28 = vpop.eup %2959  ;;  %v2564_v63 = vmul.f32 -1.442695, %v1453_v17  ;;  %v1893_v43 = vmul.f32 %v2958_v29, %v3860_v33 }
 0x1fd   : > { %v1577_v40 = vadd.f32 1.0, %v2960_v28  ;;  %v1323_v32 = vpop.f32.mrf.mxu1 }
 0x1fe   : > { %2973 = vpow2.f32 %v2564_v63  ;;  %v1454_v18 = vadd.f32 %v1323_v32, %v4134_v3  ;;  %2811 = vmatmul.mubr.f32.gmra.mxu0 %v1893_v43  ;;  %v4242_v32 = vpop.f32.mrf.mxu0 }
 0x1ff   : > { %v2962_v49 = vpop.eup %2961  ;;  %2975 = vrcp.f32 %v1577_v40  ;;  %v4234_v59 = vpop.f32.mrf.mxu1 }
 0x200   : > { %v2964_v1 = vpop.eup %2963  ;;  %v1578_v6 = vadd.f32 1.0, %v2962_v49  ;;  %v2565_v55 = vmul.f32 -1.442695, %v1454_v18 }
 0x201   : > { %v1329_v17 = vpop.f32.mrf.mxu1  ;;  %v1894_v33 = vmul.f32 %v2964_v1, %v3868_v34 }
 0x202   : > { %2977 = vrcp.f32 %v1578_v6  ;;  %v1455_v29 = vadd.f32 %v1329_v17, %v4142_v9  ;;  %v4248_v17 = vpop.f32.mrf.mxu0 }
 0x203   : > { %v2966_v28 = vpop.eup %2965  ;;  %2979 = vpow2.f32 %v2565_v55  ;;  %2813 = vmatprep.mubr.f32.mxu0 %v1894_v33  ;;  %v4240_v3 = vpop.f32.mrf.mxu1 }
 0x204   : > { %v2968_v63 = vpop.eup %2967  ;;  %v1579_v43 = vadd.f32 1.0, %v2966_v28  ;;  %v2566_v40 = vmul.f32 -1.442695, %v1455_v29 }
 0x205   : > { %v1335_v49 = vpop.f32.mrf.mxu1  ;;  %v1895_v18 = vmul.f32 %v2968_v63, %v3876_v35 }
 0x206   : > { %2981 = vrcp.f32 %v1579_v43  ;;  %v1456_v30 = vadd.f32 %v1335_v49, %v4150_v46  ;;  %v4254_v49 = vpop.f32.mrf.mxu0 }
 0x207   : > { %v2970_v34 = vpop.eup %2969  ;;  %2983 = vpow2.f32 %v2566_v40  ;;  %2814 = vmatmul.mubr.f32.gmra.mxu0 %v1895_v18  ;;  %v4246_v9 = vpop.f32.mrf.mxu1 }
 0x208   : > { %v2972_v1 = vpop.eup %2971  ;;  %v1580_v6 = vadd.f32 1.0, %v2970_v34  ;;  %v2567_v55 = vmul.f32 -1.442695, %v1456_v30 }
 0x209   : > { %v1341_v33 = vpop.f32.mrf.mxu1  ;;  %v1896_v29 = vmul.f32 %v2972_v1, %v3884_v36 }
 0x20a   : > { %2985 = vrcp.f32 %v1580_v6  ;;  %v1457_v28 = vadd.f32 %v1341_v33, %v4160_v22  ;;  %v4261_v33 = vpop.f32.mrf.mxu0 }
 0x20b   : > { %v2974_v35 = vpop.eup %2973  ;;  %2987 = vpow2.f32 %v2567_v55  ;;  %2816 = vmatprep.mubr.f32.mxu0 %v1896_v29  ;;  %v4252_v46 = vpop.f32.mrf.mxu1 }
 0x20c   : > { %v2976_v63 = vpop.eup %2975  ;;  %v1581_v43 = vadd.f32 1.0, %v2974_v35  ;;  %v2568_v40 = vmul.f32 -1.442695, %v1457_v28 }
 0x20d   : > { %v1347_v18 = vpop.f32.mrf.mxu1  ;;  %v1897_v30 = vmul.f32 %v2976_v63, %v3892_v37 }
 0x20e   : > { %2989 = vrcp.f32 %v1581_v43  ;;  %v1458_v34 = vadd.f32 %v1347_v18, %v4172_v25  ;;  %v4267_v18 = vpop.f32.mrf.mxu0 }
 0x20f   : > { %v2978_v36 = vpop.eup %2977  ;;  %2991 = vpow2.f32 %v2568_v40  ;;  %2817 = vmatmul.mubr.f32.gmra.mxu0 %v1897_v30  ;;  %v4258_v22 = vpop.f32.mrf.mxu1 }
 0x210   : > { %v2980_v1 = vpop.eup %2979  ;;  %v2569_v6 = vmul.f32 -1.442695, %v1458_v34  ;;  %v1898_v55 = vmul.f32 %v2978_v36, %v3900_v38 }
 0x211   : > { %v1582_v29 = vadd.f32 1.0, %v2980_v1  ;;  %v1353_v28 = vpop.f32.mrf.mxu1 }
 0x212   : > { %2993 = vpow2.f32 %v2569_v6  ;;  %v1459_v35 = vadd.f32 %v1353_v28, %v4182_v21  ;;  %2819 = vmatprep.mubr.f32.mxu0 %v1898_v55 }
 0x213   : > { %v2982_v37 = vpop.eup %2981  ;;  %2995 = vrcp.f32 %v1582_v29  ;;  %v4264_v25 = vpop.f32.mrf.mxu1 }
 0x214   : > { %v2984_v63 = vpop.eup %2983  ;;  %v2570_v43 = vmul.f32 -1.442695, %v1459_v35  ;;  %v1899_v40 = vmul.f32 %v2982_v37, %v3908_v39  ;;  %v4273_v29 = vpop.f32.mrf.mxu0 }
 0x215   : > { %v1583_v30 = vadd.f32 1.0, %v2984_v63  ;;  %v1359_v38 = vpop.f32.mrf.mxu1 }
 0x216   : > { %2997 = vpow2.f32 %v2570_v43  ;;  %v1460_v34 = vadd.f32 %v1359_v38, %v4192_v57  ;;  %2820 = vmatmul.mubr.f32.gmra.mxu0 %v1899_v40 }
 0x217   : > { %v2986_v36 = vpop.eup %2985  ;;  %2999 = vrcp.f32 %v1583_v30  ;;  %v4270_v21 = vpop.f32.mrf.mxu1 }
 0x218   : > { %v2988_v1 = vpop.eup %2987  ;;  %v2571_v6 = vmul.f32 -1.442695, %v1460_v34  ;;  %v1900_v55 = vmul.f32 %v2986_v36, %v3916_v41  ;;  %v4279_v30 = vpop.f32.mrf.mxu0 }
 0x219   : > { %v1584_v28 = vadd.f32 1.0, %v2988_v1  ;;  %v1365_v39 = vpop.f32.mrf.mxu1  ;;  %4627 = vst [vmem:[#allocation68_spill] sm:$0xff] %v4279_v30 }
 0x21a   : > { %3001 = vpow2.f32 %v2571_v6  ;;  %v1461_v35 = vadd.f32 %v1365_v39, %v4202_v24  ;;  %2822 = vmatprep.mubr.f32.mxu0 %v1900_v55 }
 0x21b   : > { %v2990_v37 = vpop.eup %2989  ;;  %3003 = vrcp.f32 %v1584_v28  ;;  %v4276_v57 = vpop.f32.mrf.mxu1 }
 0x21c   : > { %v2992_v63 = vpop.eup %2991  ;;  %v2572_v43 = vmul.f32 -1.442695, %v1461_v35  ;;  %v1901_v40 = vmul.f32 %v2990_v37, %v3924_v42  ;;  %v4284_v28 = vpop.f32.mrf.mxu0 }
 0x21d   : > { %v1585_v38 = vadd.f32 1.0, %v2992_v63  ;;  %v1371_v41 = vpop.f32.mrf.mxu1 }
 0x21e   : > { %3005 = vpow2.f32 %v2572_v43  ;;  %v1462_v34 = vadd.f32 %v1371_v41, %v4213_v23  ;;  %2823 = vmatmul.mubr.f32.gmra.mxu0 %v1901_v40 }
 0x21f   : > { %v2994_v36 = vpop.eup %2993  ;;  %3007 = vrcp.f32 %v1585_v38  ;;  %v4282_v24 = vpop.f32.mrf.mxu1 }
 0x220   : > { %v2996_v1 = vpop.eup %2995  ;;  %v1586_v6 = vadd.f32 1.0, %v2994_v36  ;;  %v2573_v55 = vmul.f32 -1.442695, %v1462_v34  ;;  %v4290_v38 = vpop.f32.mrf.mxu0 }
 0x221   : > { %v1377_v39 = vpop.f32.mrf.mxu1  ;;  %v1902_v42 = vmul.f32 %v2996_v1, %v3932_v44 }
 0x222   : > { %3009 = vrcp.f32 %v1586_v6  ;;  %v1463_v35 = vadd.f32 %v1377_v39, %v4225_v10  ;;  %v869_v39 = vpop.f32.mrf.mxu0 }
 0x223   : > { %v2998_v37 = vpop.eup %2997  ;;  %3011 = vpow2.f32 %v2573_v55  ;;  %2825 = vmatprep.mubr.f32.mxu0 %v1902_v42  ;;  %v4288_v23 = vpop.f32.mrf.mxu1 }
 0x224   : > { %v3000_v63 = vpop.eup %2999  ;;  %v1587_v43 = vadd.f32 1.0, %v2998_v37  ;;  %v2574_v40 = vmul.f32 -1.442695, %v1463_v35 }
 0x225   : > { %v1383_v41 = vpop.f32.mrf.mxu1  ;;  %v1903_v34 = vmul.f32 %v3000_v63, %v3940_v45 }
 0x226   : > { %3013 = vrcp.f32 %v1587_v43  ;;  %v1464_v36 = vadd.f32 %v1383_v41, %v4236_v31 }
 0x227   : > { %v3002_v44 = vpop.eup %3001  ;;  %3015 = vpow2.f32 %v2574_v40  ;;  %2826 = vmatmul.mubr.f32.gmra.mxu0 %v1903_v34  ;;  %v4294_v10 = vpop.f32.mrf.mxu1 }
 0x228   : > { %v3004_v1 = vpop.eup %3003  ;;  %v1588_v6 = vadd.f32 1.0, %v3002_v44  ;;  %v2575_v55 = vmul.f32 -1.442695, %v1464_v36  ;;  %v4300_v40 = vpop.f32.mrf.mxu0 }
 0x229   : > { %v1389_v42 = vpop.f32.mrf.mxu1  ;;  %v1904_v35 = vmul.f32 %v3004_v1, %v3948_v47 }
 0x22a   : > { %3017 = vrcp.f32 %v1588_v6  ;;  %v1465_v37 = vadd.f32 %v1389_v42, %v4248_v17 }
 0x22b   : > { %v3006_v30 = vpop.eup %3005  ;;  %3019 = vpow2.f32 %v2575_v55  ;;  %2828 = vmatprep.mubr.f32.mxu0 %v1904_v35  ;;  %v4298_v45 = vpop.f32.mrf.mxu1 }
 0x22c   : > { %v3008_v31 = vpop.eup %3007  ;;  %v1589_v63 = vadd.f32 1.0, %v3006_v30  ;;  %v2576_v43 = vmul.f32 -1.442695, %v1465_v37  ;;  %v875_v55 = vpop.f32.mrf.mxu0 }
 0x22d   : > { %v1395_v41 = vpop.f32.mrf.mxu1  ;;  %v1905_v34 = vmul.f32 %v3008_v31, %v3955_v48 }
 0x22e   : > { %3021 = vrcp.f32 %v1589_v63  ;;  %v1466_v36 = vadd.f32 %v1395_v41, %v4261_v33 }
 0x22f   : > { %v3010_v47 = vpop.eup %3009  ;;  %3023 = vpow2.f32 %v2576_v43  ;;  %2829 = vmatmul.mubr.f32.gmra.mxu0 %v1905_v34  ;;  %v4304_v17 = vpop.f32.mrf.mxu1 }
 0x230   : > { %v3012_v44 = vpop.eup %3011  ;;  %v2577_v1 = vmul.f32 -1.442695, %v1466_v36  ;;  %v1906_v6 = vmul.f32 %v3010_v47, %v3960_v50  ;;  %v4311_v43 = vpop.f32.mrf.mxu0 }
 0x231   : > { %v1590_v30 = vadd.f32 1.0, %v3012_v44  ;;  %v1401_v42 = vpop.f32.mrf.mxu1 }
 0x232   : > { %3025 = vpow2.f32 %v2577_v1  ;;  %v1467_v35 = vadd.f32 %v1401_v42, %v4273_v29  ;;  %2831 = vmatprep.mubr.f32.mxu0 %v1906_v6  ;;  %v881_v6 = vpop.f32.mrf.mxu0 }
 0x233   : > { %v3014_v48 = vpop.eup %3013  ;;  %3027 = vrcp.f32 %v1590_v30  ;;  %v4308_v37 = vpop.f32.mrf.mxu1 }
 0x234   : > { %v3016_v33 = vpop.eup %3015  ;;  %v2578_v31 = vmul.f32 -1.442695, %v1467_v35  ;;  %v1907_v63 = vmul.f32 %v3014_v48, %v3965_v51 }
 0x235   : > { %v1591_v41 = vadd.f32 1.0, %v3016_v33  ;;  %v1407_v34 = vpop.f32.mrf.mxu1 }
 0x236   : > { %3029 = vpow2.f32 %v2578_v31  ;;  %v1468_v50 = vadd.f32 %v1407_v34, %v4284_v28  ;;  %2832 = vmatmul.mubr.f32.gmra.mxu0 %v1907_v63  ;;  %v4320_v63 = vpop.f32.mrf.mxu0 }
 0x237   : > { %v3018_v36 = vpop.eup %3017  ;;  %3031 = vrcp.f32 %v1591_v41  ;;  %v4314_v29 = vpop.f32.mrf.mxu1 }
 0x238   : > { %v3020_v47 = vpop.eup %3019  ;;  %v2579_v44 = vmul.f32 -1.442695, %v1468_v50  ;;  %v1908_v1 = vmul.f32 %v3018_v36, %v3970_v52 }
 0x239   : > { %v1592_v30 = vadd.f32 1.0, %v3020_v47  ;;  %v1413_v42 = vpop.f32.mrf.mxu1 }
 0x23a   : > { %3033 = vpow2.f32 %v2579_v44  ;;  %v1469_v51 = vadd.f32 %v1413_v42, %v869_v39  ;;  %2834 = vmatprep.mubr.f32.mxu0 %v1908_v1  ;;  %v887_v1 = vpop.f32.mrf.mxu0 }
 0x23b   : > { %v3022_v35 = vpop.eup %3021  ;;  %3035 = vrcp.f32 %v1592_v30  ;;  %v4317_v48 = vpop.f32.mrf.mxu1 }
 0x23c   : > { %v3024_v28 = vpop.eup %3023  ;;  %v2580_v33 = vmul.f32 -1.442695, %v1469_v51  ;;  %v1909_v31 = vmul.f32 %v3022_v35, %v3975_v53 }
 0x23d   : > { %v1593_v41 = vadd.f32 1.0, %v3024_v28  ;;  %v1419_v34 = vpop.f32.mrf.mxu1 }
 0x23e   : > { %3037 = vpow2.f32 %v2580_v33  ;;  %v1470_v52 = vadd.f32 %v1419_v34, %v875_v55  ;;  %2835 = vmatmul.mubr.f32.gmra.mxu0 %v1909_v31  ;;  %v4327_v31 = vpop.f32.mrf.mxu0 }
 0x23f   : > { %v3026_v50 = vpop.eup %3025  ;;  %3039 = vrcp.f32 %v1593_v41  ;;  %v4322_v36 = vpop.f32.mrf.mxu1 }
 0x240   : > { %v3028_v39 = vpop.eup %3027  ;;  %v1594_v47 = vadd.f32 1.0, %v3026_v50  ;;  %v2581_v44 = vmul.f32 -1.442695, %v1470_v52 }
 0x241   : > { %v1425_v30 = vpop.f32.mrf.mxu1  ;;  %v1910_v42 = vmul.f32 %v3028_v39, %v3980_v54 }
 0x242   : > { %3041 = vrcp.f32 %v1594_v47  ;;  %v1471_v53 = vadd.f32 %v1425_v30, %v881_v6 }
 0x243   : > { %v3030_v51 = vpop.eup %3029  ;;  %3043 = vpow2.f32 %v2581_v44  ;;  %2837 = vmatprep.mubr.f32.mxu0 %v1910_v42  ;;  %v4325_v35 = vpop.f32.mrf.mxu1 }
 0x244   : > { %v3032_v55 = vpop.eup %3031  ;;  %v1595_v28 = vadd.f32 1.0, %v3030_v51  ;;  %v2582_v33 = vmul.f32 -1.442695, %v1471_v53  ;;  %v893_v44 = vpop.f32.mrf.mxu0 }
 0x245   : > { %v1431_v41 = vpop.f32.mrf.mxu1  ;;  %v1911_v34 = vmul.f32 %v3032_v55, %v3985_v56 }
 0x246   : > { %3045 = vrcp.f32 %v1595_v28  ;;  %v1472_v52 = vadd.f32 %v1431_v41, %v887_v1 }
 0x247   : > { %v3034_v50 = vpop.eup %3033  ;;  %3047 = vpow2.f32 %v2582_v33  ;;  %2838 = vmatmul.mubr.f32.gmra.mxu0 %v1911_v34  ;;  %v4330_v54 = vpop.f32.mrf.mxu1 }
 0x248   : > { %v3036_v6 = vpop.eup %3035  ;;  %v1596_v39 = vadd.f32 1.0, %v3034_v50  ;;  %v2583_v47 = vmul.f32 -1.442695, %v1472_v52 }
 0x249   : > { %v1437_v30 = vpop.f32.mrf.mxu1  ;;  %v1912_v42 = vmul.f32 %v3036_v6, %v3990_v58 }
 0x24a   : > { %3049 = vrcp.f32 %v1596_v39  ;;  %v1473_v53 = vadd.f32 %v1437_v30, %v893_v44 }
 0x24b   : > { %v3038_v51 = vpop.eup %3037  ;;  %3051 = vpow2.f32 %v2583_v47  ;;  %2840 = vmatprep.mubr.f32.mxu0 %v1912_v42 }
 0x24c   : > { %v3040_v56 = vpop.eup %3039  ;;  %v1597_v55 = vadd.f32 1.0, %v3038_v51  ;;  %v2584_v1 = vmul.f32 -1.442695, %v1473_v53 }
 0x24d   : > { %v1913_v28 = vmul.f32 %v3040_v56, %v3995_v62 }
 0x24e   : > { %3053 = vrcp.f32 %v1597_v55 }
 0x24f   : > { %v3042_v33 = vpop.eup %3041  ;;  %3055 = vpow2.f32 %v2584_v1  ;;  %2841 = vmatmul.mubr.f32.gmra.mxu0 %v1913_v28 }
 0x250   : > { %v3044_v41 = vpop.eup %3043  ;;  %v1914_v34 = vmul.f32 %v3042_v33, %v4000_v2 }
 0x251   : > { %v1598_v52 = vadd.f32 1.0, %v3044_v41 }
 0x252   : > { %2843 = vmatprep.mubr.f32.mxu0 %v1914_v34 }
 0x253   : > { %v3046_v58 = vpop.eup %3045  ;;  %3057 = vrcp.f32 %v1598_v52  ;;  %v2585_v52 = vmul.f32 -1.442695, %v4170_v61 }
 0x254   : > { %v3048_v50 = vpop.eup %3047  ;;  %v1915_v6 = vmul.f32 %v3046_v58, %v4005_v5  ;;  %v4629_v58 = vld [vmem:[#allocation15_spill] sm:$0xff] }
 0x255   : > { %v1599_v39 = vadd.f32 1.0, %v3048_v50 }
 0x256   : > { %2844 = vmatmul.mubr.f32.gmra.mxu0 %v1915_v6  ;;  %v4631_v6 = vld [vmem:[#allocation60_spill] sm:$0xff] }
 0x257   : > { %v3050_v47 = vpop.eup %3049  ;;  %3059 = vrcp.f32 %v1599_v39 }
 0x258   : > { %v3052_v44 = vpop.eup %3051  ;;  %v1916_v62 = vmul.f32 %v3050_v47, %v4010_v8 }
 0x259   : > { %v1600_v30 = vadd.f32 1.0, %v3052_v44 }
 0x25a   : > { %2846 = vmatprep.mubr.f32.mxu0 %v1916_v62  ;;  %v4633_v62 = vld [vmem:[#allocation19_spill] sm:$0xff] }
 0x25b   : > { %v3054_v42 = vpop.eup %3053  ;;  %3061 = vrcp.f32 %v1600_v30  ;;  %v4634_v30 = vld [vmem:[#allocation63_spill] sm:$0xff] }
 0x25c   : > { %v3056_v53 = vpop.eup %3055  ;;  %v1917_v2 = vmul.f32 %v3054_v42, %v4015_v11  ;;  %v1667_v11 = vadd.f32 %v4044_v19, %v4175_v26  ;;  %v1670_v19 = vadd.f32 %v4634_v30, %v4633_v62  ;;  %v4642_v62 = vld [vmem:[#allocation25_spill] sm:$0xff] }
 0x25d   : > { %v1601_v51 = vadd.f32 1.0, %v3056_v53  ;;  %v1674_v30 = vadd.f32 %v4210_v4, %v4642_v62 }
 0x25e   : > { %2847 = vmatmul.mubr.f32.gmra.mxu0 %v1917_v2  ;;  %v2586_v34 = vmul.f32 -1.442695, %v1667_v11  ;;  %v2589_v42 = vmul.f32 -1.442695, %v1670_v19  ;;  %v4639_v11 = vld [vmem:[#allocation12_spill] sm:$0xff]  ;;  %v4643_v19 = vld [vmem:[#allocation14_spill] sm:$0xff] }
 0x25f   : > { %3063 = vrcp.f32 %v1601_v51 }
 0x260   : > { %v3058_v56 = vpop.eup %3057  ;;  %3065 = vpow2.f32 %v2586_v34 }
 0x261   : > { %v1918_v5 = vmul.f32 %v3058_v56, %v4020_v12  ;;  %v4628_v12 = vld [vmem:[#allocation61_spill] sm:$0xff]  ;;  %3067 = vpow2.f32 %v2585_v52 }
 0x262   : > { %v1669_v50 = vadd.f32 %v4629_v58, %v4628_v12  ;;  %v4635_v56 = vld [vmem:[#allocation21_spill] sm:$0xff] }
 0x263   : > { %2849 = vmatprep.mubr.f32.mxu0 %v1918_v5  ;;  %v1673_v5 = vadd.f32 %v4635_v56, %v4205_v27 }
 0x264   : > { %v3060_v55 = vpop.eup %3059 }
 0x265   : > { %v1919_v1 = vmul.f32 %v3060_v55, %v4025_v13  ;;  %v4630_v13 = vld [vmem:[#allocation16_spill] sm:$0xff]  ;;  %v4636_v55 = vld [vmem:[#allocation13_spill] sm:$0xff]  ;;  %v2592_v12 = vmul.f32 -1.442695, %v1673_v5 }
 0x266   : > { %v1668_v39 = vadd.f32 %v4631_v6, %v4630_v13  ;;  %v4640_v13 = vld [vmem:[#allocation24_spill] sm:$0xff] }
 0x267   : > { %2850 = vmatmul.mubr.f32.gmra.mxu0 %v1919_v1  ;;  %v1675_v6 = vadd.f32 %v4640_v13, %v4216_v16  ;;  %v4647_v13 = vld [vmem:[#allocation20_spill] sm:$0xff] }
 0x268   : > { %v3062_v28 = vpop.eup %3061  ;;  %v2587_v47 = vmul.f32 -1.442695, %v1668_v39 }
 0x269   : > { %v1920_v8 = vmul.f32 %v3062_v28, %v4030_v14  ;;  %v2588_v14 = vmul.f32 -1.442695, %v1669_v50  ;;  %v4637_v28 = vld [vmem:[#allocation22_spill] sm:$0xff] }
 0x26b   : > { %2852 = vmatprep.mubr.f32.mxu0 %v1920_v8  ;;  %3069 = vpow2.f32 %v2588_v14  ;;  %v4638_v8 = vld [vmem:[#allocation65_spill] sm:$0xff] }
 0x26c   : > { %v3064_v33 = vpop.eup %3063  ;;  %3071 = vpow2.f32 %v2587_v47  ;;  %v4641_v14 = vld [vmem:[#allocation17_spill] sm:$0xff] }
 0x26d   : > { %v1921_v41 = vmul.f32 %v3064_v33, %v4035_v15  ;;  %v4632_v15 = vld [vmem:[#allocation18_spill] sm:$0xff]  ;;  %v3066_v26 = vpop.eup %3065 }
 0x26e   : > { %v1671_v44 = vadd.f32 %v4632_v15, %v4195_v60  ;;  %v3068_v53 = vpop.eup %3067  ;;  %v1795_v2 = vadd.f32 1.0, %v3066_v26  ;;  %v1672_v60 = vadd.f32 %v4638_v8, %v4637_v28 }
 0x26f   : > { %2853 = vmatmul.mubr.f32.gmra.mxu0 %v1921_v41  ;;  %v1794_v41 = vadd.f32 1.0, %v3068_v53  ;;  %v2593_v53 = vmul.f32 -1.442695, %v1674_v30 }
 0x270   : > { %v2590_v61 = vmul.f32 -1.442695, %v1671_v44  ;;  %v2591_v58 = vmul.f32 -1.442695, %v1672_v60 }
 0x272   : > { %3073 = vpow2.f32 %v2590_v61  ;;  %v2594_v61 = vmul.f32 -1.442695, %v1675_v6 }
 0x273   : > { %3075 = vpow2.f32 %v2589_v42 }
 0x278   : > { %v3070_v52 = vpop.eup %3069 }
 0x279   : > { %v3072_v50 = vpop.eup %3071  ;;  %v1797_v27 = vadd.f32 1.0, %v3070_v52 }
 0x27a   : > { %v1796_v44 = vadd.f32 1.0, %v3072_v50 }
 0x27f   : > { %v3074_v42 = vpop.eup %3073 }
 0x280   : > { %v3076_v16 = vpop.eup %3075  ;;  %v1799_v5 = vadd.f32 1.0, %v3074_v42  ;;  %v3259_v42 = vld [vmem:[%s3824_s25 + $0x18] sm:$0xff] }
 0x281   : > { %v1798_v60 = vadd.f32 1.0, %v3076_v16 }
 0x2b6   : > { %v2809_v51 = vpop.f32.mrf.mxu0 }
 0x2b7   : > { %v2010_v1 = vadd.f32 %v2809_v51, %v4636_v55  ;;  %v4644_v51 = vld [vmem:[#allocation27_spill] sm:$0xff]  ;;  %v3257_v55 = vld [vmem:[%s3824_s25 + $0x8] sm:$0xff] }
 0x2b8   : > { %v2004_v33 = vpop.f32.mrf.mxu0  ;;  %v1677_v56 = vadd.f32 %v4644_v51, %v4228_v7  ;;  %v4649_v51 = vld [vmem:[#allocation31_spill] sm:$0xff] }
 0x2b9   : > { %3077 = vtanh.f32 %v2010_v1  ;;  %v2005_v34 = vadd.f32 %v2004_v33, %v4639_v11  ;;  %v4645_v33 = vld [vmem:[#allocation23_spill] sm:$0xff]  ;;  %v4646_v11 = vld [vmem:[#allocation28_spill] sm:$0xff] }
 0x2ba   : > { %3079 = vrcp.f32 %v1795_v2 }
 0x2bb   : > { %3081 = vtanh.f32 %v2005_v34  ;;  %v1676_v34 = vadd.f32 %v4222_v0, %v4646_v11 }
 0x2bc   : > { %3083 = vrcp.f32 %v1794_v41 }
 0x2bd   : > { %3085 = vpow2.f32 %v2592_v12  ;;  %v3258_v12 = vld [vmem:[%s3824_s25] sm:$0xff] }
 0x2be   : > { %v2812_v39 = vpop.f32.mrf.mxu0  ;;  %3087 = vpow2.f32 %v2591_v58 }
 0x2bf   : > { %v2020_v47 = vadd.f32 %v2812_v39, %v4641_v14 }
 0x2c0   : > { %v2014_v15 = vpop.f32.mrf.mxu0 }
 0x2c1   : > { %3089 = vtanh.f32 %v2020_v47  ;;  %v2015_v26 = vadd.f32 %v2014_v15, %v4643_v19 }
 0x2c2   : > { %3091 = vrcp.f32 %v1797_v27  ;;  %v2596_v27 = vmul.f32 -1.442695, %v1677_v56  ;;  %v1678_v56 = vadd.f32 %v4234_v59, %v4649_v51 }
 0x2c3   : > { %3093 = vtanh.f32 %v2015_v26  ;;  %v4648_v26 = vld [vmem:[#allocation30_spill] sm:$0xff] }
 0x2c4   : > { %3095 = vrcp.f32 %v1796_v44  ;;  %v2595_v44 = vmul.f32 -1.442695, %v1676_v34  ;;  %v2597_v59 = vmul.f32 -1.442695, %v1678_v56 }
 0x2c5   : > { %3097 = vpow2.f32 %v2594_v61  ;;  %v1679_v61 = vadd.f32 %v4648_v26, %v4240_v3  ;;  %v4651_v3 = vld [vmem:[#allocation26_spill] sm:$0xff] }
 0x2c6   : > { %v3078_v2 = vpop.eup %3077  ;;  %3099 = vpow2.f32 %v2593_v53 }
 0x2c7   : > { %v3080_v4 = vpop.eup %3079  ;;  %v2196_v1 = vsub.f32 %v3078_v2, %v3257_v55  ;;  %v2815_v28 = vpop.f32.mrf.mxu0  ;;  %v2598_v34 = vmul.f32 -1.442695, %v1679_v61 }
 0x2c8   : > { %v3082_v8 = vpop.eup %3081  ;;  %v2030_v41 = vadd.f32 %v2815_v28, %v4645_v33 }
 0x2c9   : > { %v2228_v52 = vmul.f32 %v3080_v4, %v2196_v1  ;;  %v2195_v58 = vsub.f32 %v3082_v8, %v3258_v12  ;;  %v2024_v50 = vpop.f32.mrf.mxu0  ;;  %v3084_v7 = vpop.eup %3083  ;;  %v4650_v4 = vld [vmem:[#allocation29_spill] sm:$0xff]  ;;  %v3260_v1 = vld [vmem:[%s3824_s25 + $0x10] sm:$0xff] }
 0x2ca   : > { %3101 = vtanh.f32 %v2030_v41  ;;  %v2025_v6 = vadd.f32 %v2024_v50, %v4647_v13  ;;  %v3086_v47 = vpop.eup %3085 }
 0x2cb   : > { %3103 = vrcp.f32 %v1799_v5  ;;  %v2260_v39 = vadd.f32 %v3257_v55, %v2228_v52  ;;  %v2227_v14 = vmul.f32 %v3084_v7, %v2195_v58  ;;  %v3088_v15 = vpop.eup %3087  ;;  %v1801_v19 = vadd.f32 1.0, %v3086_v47 }
 0x2cc   : > { %3105 = vtanh.f32 %v2025_v6  ;;  %v1800_v33 = vadd.f32 1.0, %v3088_v15  ;;  %v4652_v6 = vld [vmem:[#allocation33_spill] sm:$0xff] }
 0x2cd   : > { %3107 = vrcp.f32 %v1798_v60  ;;  %2292 = vst [vmem:[%s4376_s7 + $0x8] sm:$0xff] %v2260_v39  ;;  %v2259_v0 = vadd.f32 %v3258_v12, %v2227_v14  ;;  %v1681_v39 = vadd.f32 %v4652_v6, %v4252_v46  ;;  %v4653_v14 = vld [vmem:[#allocation35_spill] sm:$0xff] }
 0x2ce   : > { %v3090_v62 = vpop.eup %3089  ;;  %3109 = vpow2.f32 %v2596_v27 }
 0x2cf   : > { %v3092_v30 = vpop.eup %3091  ;;  %2291 = vst [vmem:[%s4376_s7] sm:$0xff] %v2259_v0  ;;  %v2198_v16 = vsub.f32 %v3090_v62, %v3259_v42  ;;  %v2818_v53 = vpop.f32.mrf.mxu0  ;;  %3111 = vpow2.f32 %v2595_v44  ;;  %v4654_v44 = vld [vmem:[#allocation34_spill] sm:$0xff]  ;;  %v3261_v62 = vld [vmem:[%s3824_s25 + $0x28] sm:$0xff] }
 0x2d0   : > { %v3094_v2 = vpop.eup %3093  ;;  %v2040_v5 = vadd.f32 %v2818_v53, %v4650_v4  ;;  %v1680_v0 = vadd.f32 %v4246_v9, %v4654_v44  ;;  %v2600_v4 = vmul.f32 -1.442695, %v1681_v39 }
 0x2d1   : > { %v2230_v55 = vmul.f32 %v3092_v30, %v2198_v16  ;;  %v2197_v28 = vsub.f32 %v3094_v2, %v3260_v1  ;;  %v2034_v8 = vpop.f32.mrf.mxu0  ;;  %v3096_v60 = vpop.eup %3095  ;;  %v3262_v2 = vld [vmem:[%s3824_s25 + $0x20] sm:$0xff] }
 0x2d2   : > { %3113 = vtanh.f32 %v2040_v5  ;;  %v2035_v41 = vadd.f32 %v2034_v8, %v4651_v3  ;;  %v3098_v11 = vpop.eup %3097  ;;  %v2599_v5 = vmul.f32 -1.442695, %v1680_v0  ;;  %v4656_v8 = vld [vmem:[#allocation36_spill] sm:$0xff] }
 0x2d3   : > { %3115 = vrcp.f32 %v1801_v19  ;;  %v2262_v52 = vadd.f32 %v3259_v42, %v2230_v55  ;;  %v2229_v12 = vmul.f32 %v3096_v60, %v2197_v28  ;;  %v3100_v50 = vpop.eup %3099  ;;  %v1803_v7 = vadd.f32 1.0, %v3098_v11  ;;  %v4655_v42 = vld [vmem:[#allocation32_spill] sm:$0xff]  ;;  %v4657_v11 = vld [vmem:[#allocation41_spill] sm:$0xff] }
 0x2d4   : > { %3117 = vtanh.f32 %v2035_v41  ;;  %v1802_v61 = vadd.f32 1.0, %v3100_v50  ;;  %v1683_v60 = vadd.f32 %v4656_v8, %v4264_v25  ;;  %v4659_v25 = vld [vmem:[#allocation38_spill] sm:$0xff] }
 0x2d5   : > { %2294 = vst [vmem:[%s4376_s7 + $0x18] sm:$0xff] %v2262_v52  ;;  %v2261_v58 = vadd.f32 %v3260_v1, %v2229_v12  ;;  %3119 = vrcp.f32 %v1800_v33  ;;  %v3263_v12 = vld [vmem:[%s3824_s25 + $0x38] sm:$0xff] }
 0x2d6   : > { %v2821_v27 = vpop.f32.mrf.mxu0  ;;  %3121 = vpow2.f32 %v2598_v34  ;;  %v2602_v39 = vmul.f32 -1.442695, %v1683_v60  ;;  %v3266_v60 = vld [vmem:[%s3824_s25 + $0x40] sm:$0xff] }
 0x2d7   : > { %v3102_v13 = vpop.eup %3101  ;;  %2293 = vst [vmem:[%s4376_s7 + $0x10] sm:$0xff] %v2261_v58  ;;  %v2050_v47 = vadd.f32 %v2821_v27, %v4653_v14  ;;  %3123 = vpow2.f32 %v2597_v59  ;;  %v4658_v27 = vld [vmem:[#allocation37_spill] sm:$0xff] }
 0x2d8   : > { %v3104_v15 = vpop.eup %3103  ;;  %v2200_v30 = vsub.f32 %v3102_v13, %v3261_v62  ;;  %v2044_v19 = vpop.f32.mrf.mxu0  ;;  %v1682_v13 = vadd.f32 %v4258_v22, %v4658_v27 }
 0x2d9   : > { %v3106_v26 = vpop.eup %3105  ;;  %3125 = vtanh.f32 %v2050_v47  ;;  %v2045_v16 = vadd.f32 %v2044_v19, %v4655_v42  ;;  %v3264_v47 = vld [vmem:[%s3824_s25 + $0x30] sm:$0xff] }
 0x2da   : > { %v3108_v53 = vpop.eup %3107  ;;  %3127 = vrcp.f32 %v1803_v7  ;;  %v2232_v46 = vmul.f32 %v3104_v15, %v2200_v30  ;;  %v2199_v51 = vsub.f32 %v3106_v26, %v3262_v2  ;;  %v2601_v26 = vmul.f32 -1.442695, %v1682_v13 }
 0x2db   : > { %v3110_v56 = vpop.eup %3109  ;;  %3129 = vtanh.f32 %v2045_v16 }
 0x2dc   : > { %v2264_v9 = vadd.f32 %v3261_v62, %v2232_v46  ;;  %v2231_v55 = vmul.f32 %v3108_v53, %v2199_v51  ;;  %3131 = vrcp.f32 %v1802_v61  ;;  %v3112_v1 = vpop.eup %3111  ;;  %v1805_v28 = vadd.f32 1.0, %v3110_v56  ;;  %v4660_v61 = vld [vmem:[#allocation39_spill] sm:$0xff] }
 0x2dd   : > { %3133 = vpow2.f32 %v2600_v4  ;;  %v1804_v7 = vadd.f32 1.0, %v3112_v1  ;;  %v1685_v42 = vadd.f32 %v4660_v61, %v4276_v57  ;;  %v4662_v1 = vld [vmem:[#allocation40_spill] sm:$0xff] }
 0x2de   : > { %2296 = vst [vmem:[%s4376_s7 + $0x28] sm:$0xff] %v2264_v9  ;;  %v2263_v33 = vadd.f32 %v3262_v2, %v2231_v55  ;;  %v2824_v3 = vpop.f32.mrf.mxu0  ;;  %3135 = vpow2.f32 %v2599_v5  ;;  %v3265_v2 = vld [vmem:[%s3824_s25 + $0x48] sm:$0xff]  ;;  %v4661_v9 = vld [vmem:[#allocation47_spill] sm:$0xff] }
 0x2df   : > { %v3114_v41 = vpop.eup %3113  ;;  %v2060_v34 = vadd.f32 %v2824_v3, %v4657_v11  ;;  %v4663_v11 = vld [vmem:[#allocation44_spill] sm:$0xff] }
 0x2e0   : > { %v3116_v52 = vpop.eup %3115  ;;  %2295 = vst [vmem:[%s4376_s7 + $0x20] sm:$0xff] %v2263_v33  ;;  %v2202_v59 = vsub.f32 %v3114_v41, %v3263_v12  ;;  %v2054_v58 = vpop.f32.mrf.mxu0  ;;  %v2604_v41 = vmul.f32 -1.442695, %v1685_v42 }
 0x2e1   : > { %v3118_v50 = vpop.eup %3117  ;;  %3137 = vtanh.f32 %v2060_v34  ;;  %v2055_v6 = vadd.f32 %v2054_v58, %v4659_v25  ;;  %v4664_v25 = vld [vmem:[#allocation42_spill] sm:$0xff] }
 0x2e2   : > { %3139 = vrcp.f32 %v1805_v28  ;;  %v2234_v14 = vmul.f32 %v3116_v52, %v2202_v59  ;;  %v2201_v15 = vsub.f32 %v3118_v50, %v3264_v47  ;;  %v3120_v44 = vpop.eup %3119  ;;  %v1684_v28 = vadd.f32 %v4270_v21, %v4662_v1 }
 0x2e3   : > { %3141 = vtanh.f32 %v2055_v6  ;;  %v3122_v0 = vpop.eup %3121  ;;  %v1687_v6 = vadd.f32 %v4664_v25, %v4288_v23  ;;  %v4667_v23 = vld [vmem:[#allocation50_spill] sm:$0xff] }
 0x2e4   : > { %v2266_v62 = vadd.f32 %v3263_v12, %v2234_v14  ;;  %v2233_v30 = vmul.f32 %v3120_v44, %v2201_v15  ;;  %v3124_v19 = vpop.eup %3123  ;;  %3143 = vrcp.f32 %v1804_v7  ;;  %v1807_v46 = vadd.f32 1.0, %v3122_v0  ;;  %v4665_v44 = vld [vmem:[#allocation43_spill] sm:$0xff] }
 0x2e5   : > { %3145 = vpow2.f32 %v2602_v39  ;;  %v1806_v5 = vadd.f32 1.0, %v3124_v19  ;;  %v2603_v21 = vmul.f32 -1.442695, %v1684_v28  ;;  %v3267_v39 = vld [vmem:[%s3824_s25 + $0x58] sm:$0xff]  ;;  %v1686_v0 = vadd.f32 %v4282_v24, %v4665_v44  ;;  %v4668_v28 = vld [vmem:[#allocation45_spill] sm:$0xff] }
 0x2e6   : > { %v3126_v22 = vpop.eup %3125  ;;  %2298 = vst [vmem:[%s4376_s7 + $0x38] sm:$0xff] %v2266_v62  ;;  %v2265_v16 = vadd.f32 %v3264_v47, %v2233_v30  ;;  %3147 = vpow2.f32 %v2601_v26  ;;  %v4666_v62 = vld [vmem:[#allocation53_spill] sm:$0xff]  ;;  %v3268_v26 = vld [vmem:[%s3824_s25 + $0x50] sm:$0xff] }
 0x2e7   : > { %v3128_v53 = vpop.eup %3127  ;;  %v2204_v51 = vsub.f32 %v3126_v22, %v3265_v2  ;;  %v2827_v56 = vpop.f32.mrf.mxu0  ;;  %v2605_v24 = vmul.f32 -1.442695, %v1686_v0 }
 0x2e8   : > { %v3130_v4 = vpop.eup %3129  ;;  %2297 = vst [vmem:[%s4376_s7 + $0x30] sm:$0xff] %v2265_v16  ;;  %v2070_v55 = vadd.f32 %v2827_v56, %v4661_v9 }
 0x2e9   : > { %v2236_v8 = vmul.f32 %v3128_v53, %v2204_v51  ;;  %v2203_v57 = vsub.f32 %v3130_v4, %v3266_v60  ;;  %v2064_v33 = vpop.f32.mrf.mxu0  ;;  %v3132_v3 = vpop.eup %3131 }
 0x2ea   : > { %3149 = vtanh.f32 %v2070_v55  ;;  %v2065_v34 = vadd.f32 %v2064_v33, %v4663_v11  ;;  %v3134_v59 = vpop.eup %3133  ;;  %v3269_v11 = vld [vmem:[%s3824_s25 + $0x68] sm:$0xff] }
 0x2eb   : > { %3151 = vrcp.f32 %v1807_v46  ;;  %v2268_v52 = vadd.f32 %v3265_v2, %v2236_v8  ;;  %v2235_v12 = vmul.f32 %v3132_v3, %v2203_v57  ;;  %v3136_v58 = vpop.eup %3135  ;;  %v1809_v13 = vadd.f32 1.0, %v3134_v59  ;;  %v4670_v3 = vld [vmem:[#allocation46_spill] sm:$0xff] }
 0x2ec   : > { %3153 = vtanh.f32 %v2065_v34  ;;  %v1808_v16 = vadd.f32 1.0, %v3136_v58  ;;  %v2606_v2 = vmul.f32 -1.442695, %v1687_v6  ;;  %v1689_v8 = vadd.f32 %v4668_v28, %v4298_v45  ;;  %v4671_v58 = vld [vmem:[#allocation58_spill] sm:$0xff] }
 0x2ed   : > { %3155 = vrcp.f32 %v1806_v5  ;;  %2300 = vst [vmem:[%s4376_s7 + $0x48] sm:$0xff] %v2268_v52  ;;  %v2267_v50 = vadd.f32 %v3266_v60, %v2235_v12  ;;  %v4669_v60 = vld [vmem:[#allocation59_spill] sm:$0xff] }
 0x2ee   : > { %v3138_v7 = vpop.eup %3137  ;;  %3157 = vpow2.f32 %v2604_v41  ;;  %v1688_v41 = vadd.f32 %v4294_v10, %v4670_v3  ;;  %v2608_v25 = vmul.f32 -1.442695, %v1689_v8 }
 0x2ef   : > { %v3140_v27 = vpop.eup %3139  ;;  %2299 = vst [vmem:[%s4376_s7 + $0x40] sm:$0xff] %v2267_v50  ;;  %v2206_v14 = vsub.f32 %v3138_v7, %v3267_v39  ;;  %v2830_v47 = vpop.f32.mrf.mxu0  ;;  %3159 = vpow2.f32 %v2603_v21  ;;  %v3270_v7 = vld [vmem:[%s3824_s25 + $0x60] sm:$0xff] }
 0x2f0   : > { %v3142_v15 = vpop.eup %3141  ;;  %v2080_v30 = vadd.f32 %v2830_v47, %v4666_v62  ;;  %v2607_v6 = vmul.f32 -1.442695, %v1688_v41 }
 0x2f1   : > { %v2238_v19 = vmul.f32 %v3140_v27, %v2206_v14  ;;  %v2205_v22 = vsub.f32 %v3142_v15, %v3268_v26  ;;  %v2074_v61 = vpop.f32.mrf.mxu0  ;;  %v3144_v42 = vpop.eup %3143  ;;  %v4672_v15 = vld [vmem:[#allocation48_spill] sm:$0xff] }
 0x2f2   : > { %3161 = vtanh.f32 %v2080_v30  ;;  %v2075_v53 = vadd.f32 %v2074_v61, %v4667_v23  ;;  %v3146_v46 = vpop.eup %3145  ;;  %v1691_v44 = vadd.f32 %v4672_v15, %v4308_v37  ;;  %v3271_v61 = vld [vmem:[%s3824_s25 + $0x78] sm:$0xff]  ;;  %v4675_v37 = vld [vmem:[#allocation62_spill] sm:$0xff] }
 0x2f3   : > { %3163 = vrcp.f32 %v1809_v13  ;;  %v2270_v51 = vadd.f32 %v3267_v39, %v2238_v19  ;;  %v2237_v56 = vmul.f32 %v3144_v42, %v2205_v22  ;;  %v3148_v5 = vpop.eup %3147  ;;  %v1811_v9 = vadd.f32 1.0, %v3146_v46  ;;  %v4673_v19 = vld [vmem:[#allocation64_spill] sm:$0xff]  ;;  %v4674_v46 = vld [vmem:[#allocation49_spill] sm:$0xff] }
 0x2f4   : > { %3165 = vtanh.f32 %v2075_v53  ;;  %v1810_v59 = vadd.f32 1.0, %v3148_v5 }
 0x2f5   : > { %2302 = vst [vmem:[%s4376_s7 + $0x58] sm:$0xff] %v2270_v51  ;;  %v2269_v4 = vadd.f32 %v3268_v26, %v2237_v56  ;;  %3167 = vrcp.f32 %v1808_v16  ;;  %v2610_v56 = vmul.f32 -1.442695, %v1691_v44 }
 0x2f6   : > { %v2833_v55 = vpop.f32.mrf.mxu0  ;;  %3169 = vpow2.f32 %v2606_v2  ;;  %v1690_v2 = vadd.f32 %v4304_v17, %v4674_v46 }
 0x2f7   : > { %v3150_v1 = vpop.eup %3149  ;;  %2301 = vst [vmem:[%s4376_s7 + $0x50] sm:$0xff] %v2269_v4  ;;  %v2090_v57 = vadd.f32 %v2833_v55, %v4669_v60  ;;  %3171 = vpow2.f32 %v2605_v24  ;;  %v3272_v4 = vld [vmem:[%s3824_s25 + $0x70] sm:$0xff] }
 0x2f8   : > { %v3152_v33 = vpop.eup %3151  ;;  %v2208_v34 = vsub.f32 %v3150_v1, %v3269_v11  ;;  %v2084_v52 = vpop.f32.mrf.mxu0  ;;  %v2609_v60 = vmul.f32 -1.442695, %v1690_v2 }
 0x2f9   : > { %v3154_v12 = vpop.eup %3153  ;;  %3173 = vtanh.f32 %v2090_v57  ;;  %v2085_v21 = vadd.f32 %v2084_v52, %v4671_v58  ;;  %v4676_v57 = vld [vmem:[#allocation51_spill] sm:$0xff] }
 0x2fa   : > { %v3156_v50 = vpop.eup %3155  ;;  %3175 = vrcp.f32 %v1811_v9  ;;  %v2240_v45 = vmul.f32 %v3152_v33, %v2208_v34  ;;  %v2207_v27 = vsub.f32 %v3154_v12, %v3270_v7  ;;  %v1693_v33 = vadd.f32 %v4676_v57, %v4317_v48  ;;  %v3273_v34 = vld [vmem:[%s3824_s25 + $0x88] sm:$0xff] }
 0x2fb   : > { %v3158_v13 = vpop.eup %3157  ;;  %3177 = vtanh.f32 %v2085_v21 }
 0x2fc   : > { %v2272_v10 = vadd.f32 %v3269_v11, %v2240_v45  ;;  %v2239_v39 = vmul.f32 %v3156_v50, %v2207_v27  ;;  %3179 = vrcp.f32 %v1810_v59  ;;  %v3160_v14 = vpop.eup %3159  ;;  %v1813_v47 = vadd.f32 1.0, %v3158_v13  ;;  %v4677_v50 = vld [vmem:[#allocation52_spill] sm:$0xff] }
 0x2fd   : > { %3181 = vpow2.f32 %v2608_v25  ;;  %v1812_v53 = vadd.f32 1.0, %v3160_v14  ;;  %v1692_v45 = vadd.f32 %v4314_v29, %v4677_v50  ;;  %v3274_v27 = vld [vmem:[%s3824_s25 + $0x80] sm:$0xff] }
 0x2fe   : > { %2304 = vst [vmem:[%s4376_s7 + $0x68] sm:$0xff] %v2272_v10  ;;  %v2271_v0 = vadd.f32 %v3270_v7, %v2239_v39  ;;  %v2836_v62 = vpop.f32.mrf.mxu0  ;;  %3183 = vpow2.f32 %v2607_v6  ;;  %v2612_v6 = vmul.f32 -1.442695, %v1693_v33  ;;  %v4678_v10 = vld [vmem:[#allocation66_spill] sm:$0xff] }
 0x2ff   : > { %v3162_v30 = vpop.eup %3161  ;;  %v2100_v26 = vadd.f32 %v2836_v62, %v4673_v19  ;;  %v2611_v29 = vmul.f32 -1.442695, %v1692_v45  ;;  %v4679_v19 = vld [vmem:[#allocation54_spill] sm:$0xff] }
 0x300   : > { %v3164_v22 = vpop.eup %3163  ;;  %2303 = vst [vmem:[%s4376_s7 + $0x60] sm:$0xff] %v2271_v0  ;;  %v2210_v42 = vsub.f32 %v3162_v30, %v3271_v61  ;;  %v2094_v16 = vpop.f32.mrf.mxu0 }
 0x301   : > { %v3166_v23 = vpop.eup %3165  ;;  %3185 = vtanh.f32 %v2100_v26  ;;  %v2095_v51 = vadd.f32 %v2094_v16, %v4675_v37  ;;  %v1695_v26 = vadd.f32 %v4679_v19, %v4325_v35  ;;  %v3276_v37 = vld [vmem:[%s3824_s25 + $0x90] sm:$0xff]  ;;  %v4681_v35 = vld [vmem:[#allocation67_spill] sm:$0xff] }
 0x302   : > { %3187 = vrcp.f32 %v1813_v47  ;;  %v2242_v24 = vmul.f32 %v3164_v22, %v2210_v42  ;;  %v2209_v5 = vsub.f32 %v3166_v23, %v3272_v4  ;;  %v3168_v9 = vpop.eup %3167  ;;  %v3275_v22 = vld [vmem:[%s3824_s25 + $0x98] sm:$0xff] }
 0x303   : > { %3189 = vtanh.f32 %v2095_v51  ;;  %v3170_v55 = vpop.eup %3169  ;;  %v4680_v23 = vld [vmem:[#allocation55_spill] sm:$0xff] }
 0x304   : > { %v2274_v1 = vadd.f32 %v3271_v61, %v2242_v24  ;;  %v2241_v28 = vmul.f32 %v3168_v9, %v2209_v5  ;;  %v3172_v8 = vpop.eup %3171  ;;  %3191 = vrcp.f32 %v1812_v53  ;;  %v1815_v11 = vadd.f32 1.0, %v3170_v55 }
 0x305   : > { %3193 = vpow2.f32 %v2610_v56  ;;  %v1814_v58 = vadd.f32 1.0, %v3172_v8  ;;  %v1694_v53 = vadd.f32 %v4322_v36, %v4680_v23  ;;  %v2614_v55 = vmul.f32 -1.442695, %v1695_v26  ;;  %v1439_v8 = vpop.f32.mrf.mxu1 }
 0x306   : > { %v3174_v17 = vpop.eup %3173  ;;  %2306 = vst [vmem:[%s4376_s7 + $0x78] sm:$0xff] %v2274_v1  ;;  %v2273_v3 = vadd.f32 %v3272_v4, %v2241_v28  ;;  %3195 = vpow2.f32 %v2609_v60 }
 0x307   : > { %v3176_v41 = vpop.eup %3175  ;;  %v2212_v52 = vsub.f32 %v3174_v17, %v3273_v34  ;;  %v2839_v12 = vpop.f32.mrf.mxu0  ;;  %v2613_v36 = vmul.f32 -1.442695, %v1694_v53 }
 0x308   : > { %v3178_v59 = vpop.eup %3177  ;;  %2305 = vst [vmem:[%s4376_s7 + $0x70] sm:$0xff] %v2273_v3  ;;  %v2110_v21 = vadd.f32 %v2839_v12, %v4219_v20  ;;  %v4682_v3 = vld [vmem:[#allocation56_spill] sm:$0xff] }
 0x309   : > { %v2244_v7 = vmul.f32 %v3176_v41, %v2212_v52  ;;  %v2211_v48 = vsub.f32 %v3178_v59, %v3274_v27  ;;  %v2104_v13 = vpop.f32.mrf.mxu0  ;;  %v3180_v25 = vpop.eup %3179  ;;  %v1697_v41 = vadd.f32 %v4682_v3, %v1439_v8  ;;  %v4683_v52 = vld [vmem:[#allocation57_spill] sm:$0xff] }
 0x30a   : > { %3197 = vtanh.f32 %v2110_v21  ;;  %v2105_v39 = vadd.f32 %v2104_v13, %v4678_v10  ;;  %v3182_v20 = vpop.eup %3181  ;;  %v1696_v12 = vadd.f32 %v4330_v54, %v4683_v52  ;;  %v3277_v59 = vld [vmem:[%s3824_s25 + $0xa8] sm:$0xff]  ;;  %v3278_v13 = vld [vmem:[%s3824_s25 + $0xa0] sm:$0xff] }
 0x30b   : > { %3199 = vrcp.f32 %v1815_v11  ;;  %v2276_v14 = vadd.f32 %v3273_v34, %v2244_v7  ;;  %v2243_v47 = vmul.f32 %v3180_v25, %v2211_v48  ;;  %v3184_v15 = vpop.eup %3183  ;;  %v1817_v30 = vadd.f32 1.0, %v3182_v20 }
 0x30c   : > { %3201 = vtanh.f32 %v2105_v39  ;;  %v1816_v4 = vadd.f32 1.0, %v3184_v15  ;;  %v2615_v54 = vmul.f32 -1.442695, %v1696_v12 }
 0x30d   : > { %3203 = vrcp.f32 %v1814_v58  ;;  %2308 = vst [vmem:[%s4376_s7 + $0x88] sm:$0xff] %v2276_v14  ;;  %v2275_v44 = vadd.f32 %v3274_v27, %v2243_v47 }
 0x30e   : > { %v3186_v0 = vpop.eup %3185  ;;  %3205 = vpow2.f32 %v2612_v6  ;;  %v2616_v6 = vmul.f32 -1.442695, %v1697_v41 }
 0x30f   : > { %v3188_v62 = vpop.eup %3187  ;;  %2307 = vst [vmem:[%s4376_s7 + $0x80] sm:$0xff] %v2275_v44  ;;  %v2214_v61 = vsub.f32 %v3186_v0, %v3275_v22  ;;  %v2842_v42 = vpop.f32.mrf.mxu0  ;;  %3207 = vpow2.f32 %v2611_v29  ;;  %v3279_v0 = vld [vmem:[%s3824_s25 + $0xb8] sm:$0xff] }
 0x310   : > { %v3190_v16 = vpop.eup %3189  ;;  %v2120_v46 = vadd.f32 %v2842_v42, %v4242_v32 }
 0x311   : > { %v2246_v2 = vmul.f32 %v3188_v62, %v2214_v61  ;;  %v2213_v51 = vsub.f32 %v3190_v16, %v3276_v37  ;;  %v2114_v56 = vpop.f32.mrf.mxu0  ;;  %v3192_v24 = vpop.eup %3191  ;;  %v3280_v16 = vld [vmem:[%s3824_s25 + $0xb0] sm:$0xff] }
 0x312   : > { %3209 = vtanh.f32 %v2120_v46  ;;  %v2115_v5 = vadd.f32 %v2114_v56, %v4681_v35  ;;  %v3194_v9 = vpop.eup %3193  ;;  %v3281_v35 = vld [vmem:[%s3824_s25 + $0xc8] sm:$0xff] }
 0x313   : > { %3211 = vrcp.f32 %v1817_v30  ;;  %v2278_v1 = vadd.f32 %v3275_v22, %v2246_v2  ;;  %v2245_v28 = vmul.f32 %v3192_v24, %v2213_v51  ;;  %v3196_v60 = vpop.eup %3195  ;;  %v1819_v17 = vadd.f32 1.0, %v3194_v9  ;;  %v4684_v22 = vld [vmem:[#allocation68_spill] sm:$0xff] }
 0x314   : > { %3213 = vtanh.f32 %v2115_v5  ;;  %v1818_v45 = vadd.f32 1.0, %v3196_v60 }
 0x315   : > { %2310 = vst [vmem:[%s4376_s7 + $0x98] sm:$0xff] %v2278_v1  ;;  %v2277_v32 = vadd.f32 %v3276_v37, %v2245_v28  ;;  %3215 = vrcp.f32 %v1816_v4 }
 0x316   : > { %v2845_v57 = vpop.f32.mrf.mxu0  ;;  %3217 = vpow2.f32 %v2614_v55 }
 0x317   : > { %v3198_v33 = vpop.eup %3197  ;;  %2309 = vst [vmem:[%s4376_s7 + $0x90] sm:$0xff] %v2277_v32  ;;  %v2130_v11 = vadd.f32 %v2845_v57, %v4267_v18  ;;  %3219 = vpow2.f32 %v2613_v36  ;;  %v3282_v36 = vld [vmem:[%s3824_s25 + $0xc0] sm:$0xff] }
 0x318   : > { %v3200_v34 = vpop.eup %3199  ;;  %v2216_v58 = vsub.f32 %v3198_v33, %v3277_v59  ;;  %v2124_v21 = vpop.f32.mrf.mxu0 }
 0x319   : > { %v3202_v50 = vpop.eup %3201  ;;  %3221 = vtanh.f32 %v2130_v11  ;;  %v2125_v7 = vadd.f32 %v2124_v21, %v4254_v49 }
 0x31a   : > { %v3204_v27 = vpop.eup %3203  ;;  %3223 = vrcp.f32 %v1819_v17  ;;  %v2248_v48 = vmul.f32 %v3200_v34, %v2216_v58  ;;  %v2215_v25 = vsub.f32 %v3202_v50, %v3278_v13 }
 0x31b   : > { %v3206_v18 = vpop.eup %3205  ;;  %3225 = vtanh.f32 %v2125_v7  ;;  %v3284_v7 = vld [vmem:[%s3824_s25 + $0xd0] sm:$0xff] }
 0x31c   : > { %v2280_v10 = vadd.f32 %v3277_v59, %v2248_v48  ;;  %v2247_v39 = vmul.f32 %v3204_v27, %v2215_v25  ;;  %3227 = vrcp.f32 %v1818_v45  ;;  %v3208_v14 = vpop.eup %3207  ;;  %v1821_v47 = vadd.f32 1.0, %v3206_v18  ;;  %v3283_v59 = vld [vmem:[%s3824_s25 + $0xd8] sm:$0xff] }
 0x31d   : > { %3229 = vpow2.f32 %v2616_v6  ;;  %v1820_v26 = vadd.f32 1.0, %v3208_v14  ;;  %v3285_v14 = vld [vmem:[%s3824_s25 + $0xe8] sm:$0xff] }
 0x31e   : > { %2312 = vst [vmem:[%s4376_s7 + $0xa8] sm:$0xff] %v2280_v10  ;;  %v2279_v20 = vadd.f32 %v3278_v13, %v2247_v39  ;;  %v2848_v15 = vpop.f32.mrf.mxu0  ;;  %3231 = vpow2.f32 %v2615_v54 }
 0x31f   : > { %v3210_v49 = vpop.eup %3209  ;;  %v2140_v29 = vadd.f32 %v2848_v15, %v4290_v38 }
 0x320   : > { %v3212_v44 = vpop.eup %3211  ;;  %2311 = vst [vmem:[%s4376_s7 + $0xa0] sm:$0xff] %v2279_v20  ;;  %v2218_v62 = vsub.f32 %v3210_v49, %v3279_v0  ;;  %v2134_v30 = vpop.f32.mrf.mxu0  ;;  %v3286_v49 = vld [vmem:[%s3824_s25 + $0xe0] sm:$0xff] }
 0x321   : > { %v3214_v19 = vpop.eup %3213  ;;  %3233 = vtanh.f32 %v2140_v29  ;;  %v2135_v61 = vadd.f32 %v2134_v30, %v4684_v22 }
 0x322   : > { %3235 = vrcp.f32 %v1821_v47  ;;  %v2250_v42 = vmul.f32 %v3212_v44, %v2218_v62  ;;  %v2217_v23 = vsub.f32 %v3214_v19, %v3280_v16  ;;  %v3216_v53 = vpop.eup %3215 }
 0x323   : > { %3237 = vtanh.f32 %v2135_v61  ;;  %v3218_v38 = vpop.eup %3217 }
 0x324   : > { %v2282_v46 = vadd.f32 %v3279_v0, %v2250_v42  ;;  %v2249_v2 = vmul.f32 %v3216_v53, %v2217_v23  ;;  %v3220_v37 = vpop.eup %3219  ;;  %3239 = vrcp.f32 %v1820_v26  ;;  %v1823_v4 = vadd.f32 1.0, %v3218_v38  ;;  %v3287_v26 = vld [vmem:[%s3824_s25 + $0xf8] sm:$0xff] }
 0x325   : > { %v1822_v17 = vadd.f32 1.0, %v3220_v37 }
 0x326   : > { %v3222_v51 = vpop.eup %3221  ;;  %2314 = vst [vmem:[%s4376_s7 + $0xb8] sm:$0xff] %v2282_v46  ;;  %v2281_v56 = vadd.f32 %v3280_v16, %v2249_v2  ;;  %v3288_v16 = vld [vmem:[%s3824_s25 + $0xf0] sm:$0xff] }
 0x327   : > { %v3224_v24 = vpop.eup %3223  ;;  %v2220_v5 = vsub.f32 %v3222_v51, %v3281_v35  ;;  %v2851_v9 = vpop.f32.mrf.mxu0 }
 0x328   : > { %v3226_v55 = vpop.eup %3225  ;;  %2313 = vst [vmem:[%s4376_s7 + $0xb0] sm:$0xff] %v2281_v56  ;;  %v2150_v1 = vadd.f32 %v2851_v9, %v4311_v43 }
 0x329   : > { %v2252_v28 = vmul.f32 %v3224_v24, %v2220_v5  ;;  %v2219_v8 = vsub.f32 %v3226_v55, %v3282_v36  ;;  %v2144_v32 = vpop.f32.mrf.mxu0  ;;  %v3228_v60 = vpop.eup %3227 }
 0x32a   : > { %3241 = vtanh.f32 %v2150_v1  ;;  %v2145_v57 = vadd.f32 %v2144_v32, %v4300_v40  ;;  %v3230_v41 = vpop.eup %3229 }
 0x32b   : > { %3243 = vrcp.f32 %v1823_v4  ;;  %v2284_v33 = vadd.f32 %v3281_v35, %v2252_v28  ;;  %v2251_v3 = vmul.f32 %v3228_v60, %v2219_v8  ;;  %v3232_v11 = vpop.eup %3231  ;;  %v1825_v12 = vadd.f32 1.0, %v3230_v41 }
 0x32c   : > { %3245 = vtanh.f32 %v2145_v57  ;;  %v1824_v25 = vadd.f32 1.0, %v3232_v11 }
 0x32d   : > { %2316 = vst [vmem:[%s4376_s7 + $0xc8] sm:$0xff] %v2284_v33  ;;  %v2283_v43 = vadd.f32 %v3282_v36, %v2251_v3  ;;  %3247 = vrcp.f32 %v1822_v17 }
 0x32e   : > { %v3234_v34 = vpop.eup %3233 }
 0x32f   : > { %v3236_v52 = vpop.eup %3235  ;;  %2315 = vst [vmem:[%s4376_s7 + $0xc0] sm:$0xff] %v2283_v43  ;;  %v2222_v58 = vsub.f32 %v3234_v34, %v3283_v59  ;;  %v2854_v21 = vpop.f32.mrf.mxu0 }
 0x330   : > { %v3238_v50 = vpop.eup %3237  ;;  %v2160_v40 = vadd.f32 %v2854_v21, %v4327_v31 }
 0x331   : > { %v2254_v45 = vmul.f32 %v3236_v52, %v2222_v58  ;;  %v2221_v27 = vsub.f32 %v3238_v50, %v3284_v7  ;;  %v2154_v48 = vpop.f32.mrf.mxu0  ;;  %v3240_v13 = vpop.eup %3239 }
 0x332   : > { %3249 = vtanh.f32 %v2160_v40  ;;  %v2155_v18 = vadd.f32 %v2154_v48, %v4320_v63 }
 0x333   : > { %3251 = vrcp.f32 %v1825_v12  ;;  %v2286_v6 = vadd.f32 %v3283_v59, %v2254_v45  ;;  %v2253_v54 = vmul.f32 %v3240_v13, %v2221_v27 }
 0x334   : > { %3253 = vtanh.f32 %v2155_v18 }
 0x335   : > { %2318 = vst [vmem:[%s4376_s7 + $0xd8] sm:$0xff] %v2286_v6  ;;  %v2285_v10 = vadd.f32 %v3284_v7, %v2253_v54  ;;  %3255 = vrcp.f32 %v1824_v25 }
 0x337   : > { %v3242_v31 = vpop.eup %3241  ;;  %2317 = vst [vmem:[%s4376_s7 + $0xd0] sm:$0xff] %v2285_v10 }
 0x338   : > { %v3244_v39 = vpop.eup %3243  ;;  %v2224_v47 = vsub.f32 %v3242_v31, %v3285_v14 }
 0x339   : > { %v3246_v20 = vpop.eup %3245 }
 0x33a   : > { %v2256_v15 = vmul.f32 %v3244_v39, %v2224_v47  ;;  %v2223_v63 = vsub.f32 %v3246_v20, %v3286_v49  ;;  %v3248_v29 = vpop.eup %3247 }
 0x33c   : > { %v2288_v44 = vadd.f32 %v3285_v14, %v2256_v15  ;;  %v2255_v0 = vmul.f32 %v3248_v29, %v2223_v63 }
 0x33e   : > { %2320 = vst [vmem:[%s4376_s7 + $0xe8] sm:$0xff] %v2288_v44  ;;  %v2287_v62 = vadd.f32 %v3286_v49, %v2255_v0 }
 0x33f   : > { %v3250_v30 = vpop.eup %3249 }
 0x340   : > { %v3252_v19 = vpop.eup %3251  ;;  %2319 = vst [vmem:[%s4376_s7 + $0xe0] sm:$0xff] %v2287_v62  ;;  %v2226_v22 = vsub.f32 %v3250_v30, %v3287_v26 }
 0x341   : > { %v3254_v61 = vpop.eup %3253 }
 0x342   : > { %v2258_v42 = vmul.f32 %v3252_v19, %v2226_v22  ;;  %v2225_v23 = vsub.f32 %v3254_v61, %v3288_v16  ;;  %v3256_v53 = vpop.eup %3255 }
 0x344   : > { %v2290_v38 = vadd.f32 %v3287_v26, %v2258_v42  ;;  %v2257_v46 = vmul.f32 %v3256_v53, %v2225_v23 }
 0x346   : > { %2322 = vst [vmem:[%s4376_s7 + $0xf8] sm:$0xff] %v2290_v38  ;;  %v2289_v2 = vadd.f32 %v3288_v16, %v2257_v46 }
 0x348   : > { %2321 = vst [vmem:[%s4376_s7 + $0xf0] sm:$0xff] %v2289_v2 }
 0x349   : > { %3380 = shalt.err (!%p3377_p11)
}
 0x34a   : > { %s3381_s16 = scalar_lea.hbm %s4508_s10, 4096  ;;  %s3385_s25 = scalar_lea.hbm %s4561_s5, 8192 }
 0x34b   : > { %p3382_p0 = scmp.ne.s32.totalorder %s4508_s10, %s3381_s16  ;;  %p3386_p3 = scmp.lt.s32.totalorder %s4508_s10, %s4561_s5 }
 0x34c   : > { %p3387_p2 = scmp.lt.s32.totalorder %s3385_s25, %s3381_s16 }
 0x34d   : > { %p3383_p1 = pnand %p3382_p0, %p3519_p5 }
 0x34e   : > { %p3388_p12 = por %p3387_p2, %p3386_p3 }
 0x34f   : > { %p3384_p13 = pneg %p3383_p1 }
 0x351   : > { %p3389_p10 = pnand %p3388_p12, %p3384_p13 }
 0x353   : > { %3392 = shalt.err (!%p3389_p10)
}
 0x354   : > { %s3449_s7 = smov 128   ;;  %s3450_s9 = smov 8  }
 0x355   : > { %2867 = dma.vmem_to_hbm [thread:$0]  (%p3519_p5), %s4510_s11, 4096, %s4508_s10, %s4516_s8, %s3449_s7, %s3449_s7, %s3450_s9  }
 0x356 PF: > { %p2889_p4 = scmp.ge.s32.totalorder %s3435_s21, 2  ;;  %s2352_s12 = sand.u32 1, %s3423_s18  }
 0x357   : > { %p4685_p7 = scmp.ne.s32.totalorder %s4564_s29, 0  ;;  %s2353_s13 = scalar_lea.sflag [#allocation4], %s2352_s12 }
 0x359   : > { %p2880_p6 = pnand %p2889_p4, %p4685_p7 }
 0x35b   : > { %p2881_p9 = pneg %p2880_p6 }
 0x35d   : > { %3418 = dma.done.wait (%p2881_p9), %s2353_s13, 4096  }
 0x35e   : > { %3420 = vsyncadd (%p2881_p9), %s2353_s13, 4294963200  ;;  %p17_p8 = scmp.ge.s32.totalorder %s3506_s24, 4   ;;  %s4686_s18 = smov %s3427_s19 }
 0x35f   : > { %s4687_s19 = smov %s3431_s20  ;;  %s4688_s20 = smov %s3517_s27 }
 0x360   : > { %s4689_s21 = smov %s3506_s24  ;;  %19 = sbr.rel (!%p17_p8) target bundleno = 5 (0x5), region = 91 }
 0x365   :  { %2358 = vsyncpa [#allocation3], 1 }
 0x366   :  { %2360 = vsyncpa [#allocation3 + $0x1], 1 }
 0x367   :  { %2361 = vsyncpa [#allocation6], 1 }
 0x368   :  { %2362 = vsyncpa [#allocation4], 1 }
 0x369   :  { %2364 = vsyncpa [#allocation4 + $0x1], 1 }

</bundles_post_ra>
